<compile_context>
chip_gen: v7x
topology: tpu7x:2x2x1
jax: 0.10.0
libtpu: 0.0.40
codegen_flags: <defaults>
</compile_context>

<pallas_src>
import numpy as np

import jax
import jax.numpy as jnp
from jax import lax
from jax.experimental import pallas as pl
from jax.experimental.pallas import tpu as pltpu


def _round_up(x, m):
    return (x + m - 1) // m * m


# ---------------------------------------------------------------------------
# Fused kernel: blocked GRU recurrence + Linear head epilogue.
# Row layout is (t, b) with batch padded to Bp (multiple of 8); gate columns are
# packed [r | z | n] with each gate padded to Hp = round_up(H, 128).
# ---------------------------------------------------------------------------
def gru_head_kernel(x_ref, wi_ref, bi_ref, wh_ref, bhn_ref, wl_ref, bl_ref,
                    y_ref, state_ref, gi_scratch, h_block):
    Bp, Hp = state_ref.shape           # padded batch / padded hidden (static)
    rows = x_ref.shape[0]              # t_blk * Bp
    t_blk = rows // Bp

    # Zero initial hidden state (torch default) on the first sequence block.
    # state_ref has a constant out-index, so it stays VMEM-resident across the
    # sequential grid and doubles as the recurrent carry.
    @pl.when(pl.program_id(0) == 0)
    def _():
        state_ref[...] = jnp.zeros_like(state_ref)

    # Block-level input projection for every timestep at once (off the serial
    # path).  b_i already contains the r/z portions of b_hh folded in.
    gi_scratch[...] = (
        jnp.dot(x_ref[...], wi_ref[...], preferred_element_type=jnp.float32)
        + bi_ref[...]
    )

    wh = wh_ref[...]                   # (Hp, 3Hp) bf16, loop-invariant
    bhn = bhn_ref[...]                 # (1, Hp)  f32

    def step(t, h):
        row = pl.multiple_of(t * Bp, Bp)                        # Bp is a multiple of 8
        gi = gi_scratch[pl.ds(row, Bp), :]                      # (Bp, 3Hp) f32
        gh = jnp.dot(h.astype(jnp.bfloat16), wh,
                     preferred_element_type=jnp.float32)        # (Bp, 3Hp) f32
        # PyTorch GRU gate order r, z, n with the r * (W_hn h + b_hn) form.
        # Lane-aligned slices: each gate starts at a multiple of 128 lanes.
        r = jax.nn.sigmoid(gi[:, 0:Hp] + gh[:, 0:Hp])
        z = jax.nn.sigmoid(gi[:, Hp:2 * Hp] + gh[:, Hp:2 * Hp])
        n = jnp.tanh(gi[:, 2 * Hp:3 * Hp] + r * (gh[:, 2 * Hp:3 * Hp] + bhn))
        h_new = (1.0 - z) * n + z * h
        h_block[pl.ds(row, Bp), :] = h_new
        return h_new

    # Capped unroll: enough for the LLO scheduler to overlap EUP sigmoid/tanh of
    # step t with the next h @ W_h, without exploding vreg pressure.
    unroll = 8 if t_blk % 8 == 0 else (4 if t_blk % 4 == 0 else
                                       (2 if t_blk % 2 == 0 else 1))
    h_final = lax.fori_loop(0, t_blk, step, state_ref[...], unroll=unroll)
    state_ref[...] = h_final

    # Fused Linear head: one bf16 MXU matmul over the whole block's hidden states
    # (hidden padding columns are exactly zero, and w_lin's padded rows are zero).
    hb = h_block[...].astype(jnp.bfloat16)
    y_ref[...] = (
        jnp.dot(hb, wl_ref[...], preferred_element_type=jnp.float32) + bl_ref[...]
    ).astype(y_ref.dtype)


# ---------------------------------------------------------------------------
# Wrapper
# ---------------------------------------------------------------------------
def _pick_seq_block(S, Bp, bytes_per_row, row_budget_bytes):
    """Largest divisor t of S whose (t*Bp) rows fit the VMEM row budget."""
    divisors = [t for t in range(1, S + 1) if S % t == 0]
    for t in sorted(divisors, reverse=True):
        rows = t * Bp
        if t != S and rows % 16 != 0:          # keep bf16/f32 tile-aligned blocks
            continue
        if rows * bytes_per_row <= row_budget_bytes:
            return t
    for t in sorted(divisors):                 # fallback: smallest aligned block
        if t == S or (t * Bp) % 16 == 0:
            return t
    return S


def rec_rnn_forward(x, params, seq_block=None):
    """x: (seq, batch, input).  Returns (y_hat (seq*batch, out), state (1, batch, hidden))."""
    S, B, I = x.shape
    H = params["hidden_size"]
    wi, bi = params["w_i"], params["b_i"]        # (I, 3Hp) bf16, (1, 3Hp) f32
    wh, bhn = params["w_h"], params["b_hn"]      # (Hp, 3Hp) bf16, (1, Hp) f32
    wl, bl = params["w_lin"], params["b_lin"]    # (Hp, O) bf16, (1, O) f32
    Hp = wh.shape[0]
    O = wl.shape[1]
    Bp = _round_up(B, 8)

    # VMEM budget (sized for v7x's 64 MiB physical VMEM): double-buffered x/y
    # blocks + gi/h scratches per row, weights single-buffered (VMEM-resident).
    bytes_per_row = 2 * I * 2 + 2 * O * 4 + 3 * Hp * 4 + Hp * 4
    fixed_bytes = (wi.size + wh.size + wl.size) * 2 \
        + (bi.size + bhn.size + bl.size) * 4 + Bp * Hp * 4
    budget = 28 * 1024 * 1024
    if seq_block is not None:
        t_blk = seq_block
    else:
        t_blk = _pick_seq_block(S, Bp, bytes_per_row, max(budget - fixed_bytes, 0))
    assert S % t_blk == 0
    n_blk = S // t_blk
    rows_blk = t_blk * Bp

    vmem_need = fixed_bytes + rows_blk * bytes_per_row
    vmem_limit = int(min(max(2 * vmem_need, 16 * 1024 * 1024), 48 * 1024 * 1024))

    # Pad batch to a sublane multiple; padded rows stay exactly zero through the GRU.
    if Bp != B:
        x = jnp.pad(x, ((0, 0), (0, Bp - B), (0, 0)))
    x2d = x.reshape(S * Bp, I).astype(jnp.bfloat16)     # rows ordered (t, b)

    weight_spec = pl.BlockSpec(memory_space=pltpu.MemorySpace.VMEM)  # single-buffered

    y_pad, state_pad = pl.pallas_call(
        gru_head_kernel,
        out_shape=(
            jax.ShapeDtypeStruct((S * Bp, O), jnp.float32),
            jax.ShapeDtypeStruct((Bp, Hp), jnp.float32),
        ),
        grid_spec=pltpu.PrefetchScalarGridSpec(
            num_scalar_prefetch=0,
            grid=(n_blk,),
            in_specs=[
                pl.BlockSpec((rows_blk, I), lambda t: (t, 0)),   # x block
                weight_spec,                                     # fused W_i
                weight_spec,                                     # fused b_i (+ b_h r/z)
                weight_spec,                                     # fused W_h
                weight_spec,                                     # b_hn
                weight_spec,                                     # W_lin
                weight_spec,                                     # b_lin
            ],
            out_specs=[
                pl.BlockSpec((rows_blk, O), lambda t: (t, 0)),   # y_hat block
                pl.BlockSpec((Bp, Hp), lambda t: (0, 0)),        # resident final state
            ],
            scratch_shapes=[
                pltpu.VMEM((rows_blk, 3 * Hp), jnp.float32),     # per-block input gates
                pltpu.VMEM((rows_blk, Hp), jnp.float32),         # per-block hidden states
            ],
        ),
        # Sequence axis is a true recurrence: must stay sequential ("arbitrary").
        compiler_params=pltpu.CompilerParams(
            dimension_semantics=("arbitrary",),
            vmem_limit_bytes=vmem_limit,
        ),
    )(x2d, wi, bi, wh, bhn, wl, bl)

    y_hat = y_pad.reshape(S, Bp, O)[:, :B, :].reshape(S * B, O)
    state = state_pad[:B, :H].reshape(1, B, H)
    return y_hat, state


# ---------------------------------------------------------------------------
# Parameters (PyTorch-style init) packed into fused, lane-padded bf16 layouts.
# ---------------------------------------------------------------------------
def make_params(key, input_size, hidden_size, output_size):
    I, H, O = input_size, hidden_size, output_size
    Hp = _round_up(H, 128)
    k = jax.random.split(key, 6)
    bound = 1.0 / np.sqrt(H)
    # torch layout: weight_ih (3H, I), weight_hh (3H, H), gate order r, z, n.
    w_ih = jax.random.uniform(k[0], (3 * H, I), jnp.float32, -bound, bound)
    w_hh = jax.random.uniform(k[1], (3 * H, H), jnp.float32, -bound, bound)
    b_ih = jax.random.uniform(k[2], (3 * H,), jnp.float32, -bound, bound)
    b_hh = jax.random.uniform(k[3], (3 * H,), jnp.float32, -bound, bound)
    w_lin = jax.random.uniform(k[4], (O, H), jnp.float32, -bound, bound)
    b_lin = jax.random.uniform(k[5], (O,), jnp.float32, -bound, bound)

    w_ih_np, w_hh_np = np.asarray(w_ih), np.asarray(w_hh)
    b_ih_np, b_hh_np = np.asarray(b_ih), np.asarray(b_hh)
    w_lin_np, b_lin_np = np.asarray(w_lin), np.asarray(b_lin)

    # Gate-fused, lane-padded layouts: columns [r | z | n], each gate padded to Hp.
    w_i = np.zeros((I, 3 * Hp), np.float32)
    w_h = np.zeros((Hp, 3 * Hp), np.float32)
    b_i = np.zeros((1, 3 * Hp), np.float32)
    b_hn = np.zeros((1, Hp), np.float32)
    for g in range(3):
        w_i[:, g * Hp:g * Hp + H] = w_ih_np[g * H:(g + 1) * H, :].T
        w_h[:H, g * Hp:g * Hp + H] = w_hh_np[g * H:(g + 1) * H, :].T
    # Fold the r/z portions of b_hh into the block-level input-projection bias;
    # only b_hn stays on the per-step path (inside r * (W_hn h + b_hn)).
    b_i[0, 0:H] = b_ih_np[0:H] + b_hh_np[0:H]
    b_i[0, Hp:Hp + H] = b_ih_np[H:2 * H] + b_hh_np[H:2 * H]
    b_i[0, 2 * Hp:2 * Hp + H] = b_ih_np[2 * H:3 * H]
    b_hn[0, :H] = b_hh_np[2 * H:3 * H]

    w_l = np.zeros((Hp, O), np.float32)
    w_l[:H, :] = w_lin_np.T

    params = {
        "hidden_size": H,
        "w_i": jnp.asarray(w_i, jnp.bfloat16),
        "b_i": jnp.asarray(b_i, jnp.float32),
        "w_h": jnp.asarray(w_h, jnp.bfloat16),
        "b_hn": jnp.asarray(b_hn, jnp.float32),
        "w_lin": jnp.asarray(w_l, jnp.bfloat16),
        "b_lin": jnp.asarray(b_lin_np.reshape(1, O), jnp.float32),
    }
    torch_like = (w_ih_np, w_hh_np, b_ih_np, b_hh_np, w_lin_np, b_lin_np)
    return params, torch_like


def reference_forward(x, torch_like):
    """Pure-JAX f32 reference reproducing torch.nn.GRU + Linear semantics."""
    w_ih, w_hh, b_ih, b_hh, w_lin, b_lin = torch_like
    S, B, I = x.shape
    H = w_hh.shape[1]
    h = jnp.zeros((B, H), jnp.float32)
    ys = []
    for t in range(S):
        gi = x[t] @ w_ih.T + b_ih
        gh = h @ w_hh.T + b_hh
        r = jax.nn.sigmoid(gi[:, :H] + gh[:, :H])
        z = jax.nn.sigmoid(gi[:, H:2 * H] + gh[:, H:2 * H])
        n = jnp.tanh(gi[:, 2 * H:] + r * gh[:, 2 * H:])
        h = (1.0 - z) * n + z * h
        ys.append(h)
    y = jnp.stack(ys, axis=0)                      # (S, B, H)
    y_hat = y.reshape(-1, H) @ w_lin.T + b_lin     # (S*B, O)
    return y_hat, h[None]                          # state (1, B, H)


if __name__ == "__main__":
    seq_len, batch = 8, 4
    input_size, hidden_size, output_size = 16, 32, 8

    key = jax.random.PRNGKey(0)
    kx, kp = jax.random.split(key)
    x = jax.random.normal(kx, (seq_len, batch, input_size), jnp.float32)
    params, torch_like = make_params(kp, input_size, hidden_size, output_size)

    y_hat, state = rec_rnn_forward(x, params)
    jax.block_until_ready((y_hat, state))

    y_ref, state_ref = reference_forward(x, torch_like)
    assert y_hat.shape == (seq_len * batch, output_size)
    assert state.shape == (1, batch, hidden_size)
    # bf16 MXU operands (f32 accumulation / gate math) -> relaxed, re-validated tolerance.
    np.testing.assert_allclose(np.asarray(y_hat), np.asarray(y_ref), rtol=2e-2, atol=2e-2)
    np.testing.assert_allclose(np.asarray(state), np.asarray(state_ref), rtol=2e-2, atol=2e-2)

    print("KERNEL_OK")
</pallas_src>

<mosaic_0001>
module attributes {stable_mosaic.version = 11 : i64} {
  func.func @gru_head_kernel(%arg0: i32, %arg1: memref<64x16xbf16, #tpu.memory_space<vmem>>, %arg2: memref<16x384xbf16, #tpu.memory_space<vmem>>, %arg3: memref<1x384xf32, #tpu.memory_space<vmem>>, %arg4: memref<128x384xbf16, #tpu.memory_space<vmem>>, %arg5: memref<1x128xf32, #tpu.memory_space<vmem>>, %arg6: memref<128x8xbf16, #tpu.memory_space<vmem>>, %arg7: memref<1x8xf32, #tpu.memory_space<vmem>>, %arg8: memref<64x8xf32, #tpu.memory_space<vmem>>, %arg9: memref<8x128xf32, #tpu.memory_space<vmem>>, %arg10: memref<64x384xf32, #tpu.memory_space<vmem>>, %arg11: memref<64x128xf32, #tpu.memory_space<vmem>>) attributes {dimension_semantics = [#tpu.dimension_semantics<arbitrary>], iteration_bounds = array<i64: 1>, scalar_prefetch = 0 : i64, scratch_operands = 2 : i64, tpu.core_type = #tpu.core_type<tc>, window_params = [{transform_indices = @transform_0, window_bounds = array<i64: 64, 16>}, {pipeline_mode = #tpu.pipeline_mode<synchronous>, transform_indices = @transform_1, window_bounds = array<i64: 16, 384>}, {pipeline_mode = #tpu.pipeline_mode<synchronous>, transform_indices = @transform_2, window_bounds = array<i64: 1, 384>}, {pipeline_mode = #tpu.pipeline_mode<synchronous>, transform_indices = @transform_3, window_bounds = array<i64: 128, 384>}, {pipeline_mode = #tpu.pipeline_mode<synchronous>, transform_indices = @transform_4, window_bounds = array<i64: 1, 128>}, {pipeline_mode = #tpu.pipeline_mode<synchronous>, transform_indices = @transform_5, window_bounds = array<i64: 128, 8>}, {pipeline_mode = #tpu.pipeline_mode<synchronous>, transform_indices = @transform_6, window_bounds = array<i64: 1, 8>}, {transform_indices = @transform_7, window_bounds = array<i64: 64, 8>}, {pipeline_mode = #tpu.pipeline_mode<synchronous>, transform_indices = @transform_8, window_bounds = array<i64: 8, 128>}]} {
    %c0_i32 = arith.constant 0 : i32
    %0 = arith.cmpi eq, %arg0, %c0_i32 : i32
    %1 = arith.extui %0 : i1 to i32
    %c0_i32_0 = arith.constant 0 : i32
    %2 = arith.cmpi ne, %1, %c0_i32_0 : i32
    scf.if %2 {
      %cst_82 = arith.constant 0.000000e+00 : f32
      %310 = vector.broadcast %cst_82 : f32 to vector<8x128xf32>
      %c0_83 = arith.constant 0 : index
      %c0_84 = arith.constant 0 : index
      %311 = vector.load %arg9[%c0_83, %c0_84] : memref<8x128xf32, #tpu.memory_space<vmem>>, vector<8x128xf32>
      tpu.vector_store %arg9[%c0_83, %c0_84], %310 {strides = array<i32>} : memref<8x128xf32, #tpu.memory_space<vmem>>, vector<8x128xf32>,
    } else {
    }
    %c0 = arith.constant 0 : index
    %c0_1 = arith.constant 0 : index
    %3 = vector.load %arg1[%c0, %c0_1] : memref<64x16xbf16, #tpu.memory_space<vmem>>, vector<64x16xbf16>
    %c0_2 = arith.constant 0 : index
    %c0_3 = arith.constant 0 : index
    %4 = vector.load %arg2[%c0_2, %c0_3] : memref<16x384xbf16, #tpu.memory_space<vmem>>, vector<16x384xbf16>
    %cst = arith.constant dense<0.000000e+00> : vector<64x384xf32>
    %5 = tpu.matmul %3, %4, %cst {dimension_numbers = #tpu.dot_dimension_numbers<[1], [0], [0], [1], [0, 0, 1, 1], [], []>} : vector<64x16xbf16>, vector<16x384xbf16>, vector<64x384xf32> -> vector<64x384xf32>
    %c0_4 = arith.constant 0 : index
    %c0_5 = arith.constant 0 : index
    %6 = vector.load %arg3[%c0_4, %c0_5] : memref<1x384xf32, #tpu.memory_space<vmem>>, vector<1x384xf32>
    %7 = vector.broadcast %6 : vector<1x384xf32> to vector<64x384xf32>
    %8 = arith.addf %5, %7 : vector<64x384xf32>
    %c0_6 = arith.constant 0 : index
    %c0_7 = arith.constant 0 : index
    %9 = vector.load %arg10[%c0_6, %c0_7] : memref<64x384xf32, #tpu.memory_space<vmem>>, vector<64x384xf32>
    tpu.vector_store %arg10[%c0_6, %c0_7], %8 {strides = array<i32>} : memref<64x384xf32, #tpu.memory_space<vmem>>, vector<64x384xf32>,
    %c0_8 = arith.constant 0 : index
    %c0_9 = arith.constant 0 : index
    %10 = vector.load %arg4[%c0_8, %c0_9] : memref<128x384xbf16, #tpu.memory_space<vmem>>, vector<128x384xbf16>
    %c0_10 = arith.constant 0 : index
    %c0_11 = arith.constant 0 : index
    %11 = vector.load %arg5[%c0_10, %c0_11] : memref<1x128xf32, #tpu.memory_space<vmem>>, vector<1x128xf32>
    %c0_12 = arith.constant 0 : index
    %c0_13 = arith.constant 0 : index
    %12 = vector.load %arg9[%c0_12, %c0_13] : memref<8x128xf32, #tpu.memory_space<vmem>>, vector<8x128xf32>
    %c0_i32_14 = arith.constant 0 : i32
    %c8_i32 = arith.constant 8 : i32
    %13 = arith.muli %c0_i32_14, %c8_i32 : i32
    %14 = tpu.assume_multiple %13, 8 : i32
    %15 = arith.index_cast %14 : i32 to index
    %c0_15 = arith.constant 0 : index
    %16 = vector.load %arg10[%15, %c0_15] : memref<64x384xf32, #tpu.memory_space<vmem>>, vector<8x384xf32>
    %17 = arith.truncf %12 : vector<8x128xf32> to vector<8x128xbf16>
    %cst_16 = arith.constant dense<0.000000e+00> : vector<8x384xf32>
    %18 = tpu.matmul %17, %10, %cst_16 {dimension_numbers = #tpu.dot_dimension_numbers<[1], [0], [0], [1], [0, 0, 1, 1], [], []>} : vector<8x128xbf16>, vector<128x384xbf16>, vector<8x384xf32> -> vector<8x384xf32>
    %19 = vector.extract_strided_slice %16 {offsets = [0, 0], sizes = [8, 128], strides = [1, 1]} : vector<8x384xf32> to vector<8x128xf32>
    %20 = vector.extract_strided_slice %18 {offsets = [0, 0], sizes = [8, 128], strides = [1, 1]} : vector<8x384xf32> to vector<8x128xf32>
    %21 = arith.addf %19, %20 : vector<8x128xf32>
    %22 = arith.negf %21 : vector<8x128xf32>
    %23 = math.exp %22 : vector<8x128xf32>
    %cst_17 = arith.constant 1.000000e+00 : f32
    %24 = vector.broadcast %cst_17 : f32 to vector<8x128xf32>
    %25 = arith.addf %24, %23 : vector<8x128xf32>
    %26 = arith.divf %24, %25 : vector<8x128xf32>
    %27 = vector.extract_strided_slice %16 {offsets = [0, 128], sizes = [8, 128], strides = [1, 1]} : vector<8x384xf32> to vector<8x128xf32>
    %28 = vector.extract_strided_slice %18 {offsets = [0, 128], sizes = [8, 128], strides = [1, 1]} : vector<8x384xf32> to vector<8x128xf32>
    %29 = arith.addf %27, %28 : vector<8x128xf32>
    %30 = arith.negf %29 : vector<8x128xf32>
    %31 = math.exp %30 : vector<8x128xf32>
    %cst_18 = arith.constant 1.000000e+00 : f32
    %32 = vector.broadcast %cst_18 : f32 to vector<8x128xf32>
    %33 = arith.addf %32, %31 : vector<8x128xf32>
    %34 = arith.divf %32, %33 : vector<8x128xf32>
    %35 = vector.extract_strided_slice %16 {offsets = [0, 256], sizes = [8, 128], strides = [1, 1]} : vector<8x384xf32> to vector<8x128xf32>
    %36 = vector.extract_strided_slice %18 {offsets = [0, 256], sizes = [8, 128], strides = [1, 1]} : vector<8x384xf32> to vector<8x128xf32>
    %37 = vector.broadcast %11 : vector<1x128xf32> to vector<8x128xf32>
    %38 = arith.addf %36, %37 : vector<8x128xf32>
    %39 = arith.mulf %26, %38 : vector<8x128xf32>
    %40 = arith.addf %35, %39 : vector<8x128xf32>
    %41 = math.tanh %40 : vector<8x128xf32>
    %cst_19 = arith.constant 1.000000e+00 : f32
    %42 = vector.broadcast %cst_19 : f32 to vector<8x128xf32>
    %43 = arith.subf %42, %34 : vector<8x128xf32>
    %44 = arith.mulf %43, %41 : vector<8x128xf32>
    %45 = arith.mulf %34, %12 : vector<8x128xf32>
    %46 = arith.addf %44, %45 : vector<8x128xf32>
    %47 = arith.index_cast %14 : i32 to index
    %c0_20 = arith.constant 0 : index
    %48 = vector.load %arg11[%47, %c0_20] : memref<64x128xf32, #tpu.memory_space<vmem>>, vector<8x128xf32>
    tpu.vector_store %arg11[%47, %c0_20], %46 {strides = array<i32>} : memref<64x128xf32, #tpu.memory_space<vmem>>, vector<8x128xf32>,
    %c1_i32 = arith.constant 1 : i32
    %c8_i32_21 = arith.constant 8 : i32
    %49 = arith.muli %c1_i32, %c8_i32_21 : i32
    %50 = tpu.assume_multiple %49, 8 : i32
    %51 = arith.index_cast %50 : i32 to index
    %c0_22 = arith.constant 0 : index
    %52 = vector.load %arg10[%51, %c0_22] : memref<64x384xf32, #tpu.memory_space<vmem>>, vector<8x384xf32>
    %53 = arith.truncf %46 : vector<8x128xf32> to vector<8x128xbf16>
    %cst_23 = arith.constant dense<0.000000e+00> : vector<8x384xf32>
    %54 = tpu.matmul %53, %10, %cst_23 {dimension_numbers = #tpu.dot_dimension_numbers<[1], [0], [0], [1], [0, 0, 1, 1], [], []>} : vector<8x128xbf16>, vector<128x384xbf16>, vector<8x384xf32> -> vector<8x384xf32>
    %55 = vector.extract_strided_slice %52 {offsets = [0, 0], sizes = [8, 128], strides = [1, 1]} : vector<8x384xf32> to vector<8x128xf32>
    %56 = vector.extract_strided_slice %54 {offsets = [0, 0], sizes = [8, 128], strides = [1, 1]} : vector<8x384xf32> to vector<8x128xf32>
    %57 = arith.addf %55, %56 : vector<8x128xf32>
    %58 = arith.negf %57 : vector<8x128xf32>
    %59 = math.exp %58 : vector<8x128xf32>
    %cst_24 = arith.constant 1.000000e+00 : f32
    %60 = vector.broadcast %cst_24 : f32 to vector<8x128xf32>
    %61 = arith.addf %60, %59 : vector<8x128xf32>
    %62 = arith.divf %60, %61 : vector<8x128xf32>
    %63 = vector.extract_strided_slice %52 {offsets = [0, 128], sizes = [8, 128], strides = [1, 1]} : vector<8x384xf32> to vector<8x128xf32>
    %64 = vector.extract_strided_slice %54 {offsets = [0, 128], sizes = [8, 128], strides = [1, 1]} : vector<8x384xf32> to vector<8x128xf32>
    %65 = arith.addf %63, %64 : vector<8x128xf32>
    %66 = arith.negf %65 : vector<8x128xf32>
    %67 = math.exp %66 : vector<8x128xf32>
    %cst_25 = arith.constant 1.000000e+00 : f32
    %68 = vector.broadcast %cst_25 : f32 to vector<8x128xf32>
    %69 = arith.addf %68, %67 : vector<8x128xf32>
    %70 = arith.divf %68, %69 : vector<8x128xf32>
    %71 = vector.extract_strided_slice %52 {offsets = [0, 256], sizes = [8, 128], strides = [1, 1]} : vector<8x384xf32> to vector<8x128xf32>
    %72 = vector.extract_strided_slice %54 {offsets = [0, 256], sizes = [8, 128], strides = [1, 1]} : vector<8x384xf32> to vector<8x128xf32>
    %73 = vector.broadcast %11 : vector<1x128xf32> to vector<8x128xf32>
    %74 = arith.addf %72, %73 : vector<8x128xf32>
    %75 = arith.mulf %62, %74 : vector<8x128xf32>
    %76 = arith.addf %71, %75 : vector<8x128xf32>
    %77 = math.tanh %76 : vector<8x128xf32>
    %cst_26 = arith.constant 1.000000e+00 : f32
    %78 = vector.broadcast %cst_26 : f32 to vector<8x128xf32>
    %79 = arith.subf %78, %70 : vector<8x128xf32>
    %80 = arith.mulf %79, %77 : vector<8x128xf32>
    %81 = arith.mulf %70, %46 : vector<8x128xf32>
    %82 = arith.addf %80, %81 : vector<8x128xf32>
    %83 = arith.index_cast %50 : i32 to index
    %c0_27 = arith.constant 0 : index
    %84 = vector.load %arg11[%83, %c0_27] : memref<64x128xf32, #tpu.memory_space<vmem>>, vector<8x128xf32>
    tpu.vector_store %arg11[%83, %c0_27], %82 {strides = array<i32>} : memref<64x128xf32, #tpu.memory_space<vmem>>, vector<8x128xf32>,
    %c2_i32 = arith.constant 2 : i32
    %c8_i32_28 = arith.constant 8 : i32
    %85 = arith.muli %c2_i32, %c8_i32_28 : i32
    %86 = tpu.assume_multiple %85, 8 : i32
    %87 = arith.index_cast %86 : i32 to index
    %c0_29 = arith.constant 0 : index
    %88 = vector.load %arg10[%87, %c0_29] : memref<64x384xf32, #tpu.memory_space<vmem>>, vector<8x384xf32>
    %89 = arith.truncf %82 : vector<8x128xf32> to vector<8x128xbf16>
    %cst_30 = arith.constant dense<0.000000e+00> : vector<8x384xf32>
    %90 = tpu.matmul %89, %10, %cst_30 {dimension_numbers = #tpu.dot_dimension_numbers<[1], [0], [0], [1], [0, 0, 1, 1], [], []>} : vector<8x128xbf16>, vector<128x384xbf16>, vector<8x384xf32> -> vector<8x384xf32>
    %91 = vector.extract_strided_slice %88 {offsets = [0, 0], sizes = [8, 128], strides = [1, 1]} : vector<8x384xf32> to vector<8x128xf32>
    %92 = vector.extract_strided_slice %90 {offsets = [0, 0], sizes = [8, 128], strides = [1, 1]} : vector<8x384xf32> to vector<8x128xf32>
    %93 = arith.addf %91, %92 : vector<8x128xf32>
    %94 = arith.negf %93 : vector<8x128xf32>
    %95 = math.exp %94 : vector<8x128xf32>
    %cst_31 = arith.constant 1.000000e+00 : f32
    %96 = vector.broadcast %cst_31 : f32 to vector<8x128xf32>
    %97 = arith.addf %96, %95 : vector<8x128xf32>
    %98 = arith.divf %96, %97 : vector<8x128xf32>
    %99 = vector.extract_strided_slice %88 {offsets = [0, 128], sizes = [8, 128], strides = [1, 1]} : vector<8x384xf32> to vector<8x128xf32>
    %100 = vector.extract_strided_slice %90 {offsets = [0, 128], sizes = [8, 128], strides = [1, 1]} : vector<8x384xf32> to vector<8x128xf32>
    %101 = arith.addf %99, %100 : vector<8x128xf32>
    %102 = arith.negf %101 : vector<8x128xf32>
    %103 = math.exp %102 : vector<8x128xf32>
    %cst_32 = arith.constant 1.000000e+00 : f32
    %104 = vector.broadcast %cst_32 : f32 to vector<8x128xf32>
    %105 = arith.addf %104, %103 : vector<8x128xf32>
    %106 = arith.divf %104, %105 : vector<8x128xf32>
    %107 = vector.extract_strided_slice %88 {offsets = [0, 256], sizes = [8, 128], strides = [1, 1]} : vector<8x384xf32> to vector<8x128xf32>
    %108 = vector.extract_strided_slice %90 {offsets = [0, 256], sizes = [8, 128], strides = [1, 1]} : vector<8x384xf32> to vector<8x128xf32>
    %109 = vector.broadcast %11 : vector<1x128xf32> to vector<8x128xf32>
    %110 = arith.addf %108, %109 : vector<8x128xf32>
    %111 = arith.mulf %98, %110 : vector<8x128xf32>
    %112 = arith.addf %107, %111 : vector<8x128xf32>
    %113 = math.tanh %112 : vector<8x128xf32>
    %cst_33 = arith.constant 1.000000e+00 : f32
    %114 = vector.broadcast %cst_33 : f32 to vector<8x128xf32>
    %115 = arith.subf %114, %106 : vector<8x128xf32>
    %116 = arith.mulf %115, %113 : vector<8x128xf32>
    %117 = arith.mulf %106, %82 : vector<8x128xf32>
    %118 = arith.addf %116, %117 : vector<8x128xf32>
    %119 = arith.index_cast %86 : i32 to index
    %c0_34 = arith.constant 0 : index
    %120 = vector.load %arg11[%119, %c0_34] : memref<64x128xf32, #tpu.memory_space<vmem>>, vector<8x128xf32>
    tpu.vector_store %arg11[%119, %c0_34], %118 {strides = array<i32>} : memref<64x128xf32, #tpu.memory_space<vmem>>, vector<8x128xf32>,
    %c3_i32 = arith.constant 3 : i32
    %c8_i32_35 = arith.constant 8 : i32
    %121 = arith.muli %c3_i32, %c8_i32_35 : i32
    %122 = tpu.assume_multiple %121, 8 : i32
    %123 = arith.index_cast %122 : i32 to index
    %c0_36 = arith.constant 0 : index
    %124 = vector.load %arg10[%123, %c0_36] : memref<64x384xf32, #tpu.memory_space<vmem>>, vector<8x384xf32>
    %125 = arith.truncf %118 : vector<8x128xf32> to vector<8x128xbf16>
    %cst_37 = arith.constant dense<0.000000e+00> : vector<8x384xf32>
    %126 = tpu.matmul %125, %10, %cst_37 {dimension_numbers = #tpu.dot_dimension_numbers<[1], [0], [0], [1], [0, 0, 1, 1], [], []>} : vector<8x128xbf16>, vector<128x384xbf16>, vector<8x384xf32> -> vector<8x384xf32>
    %127 = vector.extract_strided_slice %124 {offsets = [0, 0], sizes = [8, 128], strides = [1, 1]} : vector<8x384xf32> to vector<8x128xf32>
    %128 = vector.extract_strided_slice %126 {offsets = [0, 0], sizes = [8, 128], strides = [1, 1]} : vector<8x384xf32> to vector<8x128xf32>
    %129 = arith.addf %127, %128 : vector<8x128xf32>
    %130 = arith.negf %129 : vector<8x128xf32>
    %131 = math.exp %130 : vector<8x128xf32>
    %cst_38 = arith.constant 1.000000e+00 : f32
    %132 = vector.broadcast %cst_38 : f32 to vector<8x128xf32>
    %133 = arith.addf %132, %131 : vector<8x128xf32>
    %134 = arith.divf %132, %133 : vector<8x128xf32>
    %135 = vector.extract_strided_slice %124 {offsets = [0, 128], sizes = [8, 128], strides = [1, 1]} : vector<8x384xf32> to vector<8x128xf32>
    %136 = vector.extract_strided_slice %126 {offsets = [0, 128], sizes = [8, 128], strides = [1, 1]} : vector<8x384xf32> to vector<8x128xf32>
    %137 = arith.addf %135, %136 : vector<8x128xf32>
    %138 = arith.negf %137 : vector<8x128xf32>
    %139 = math.exp %138 : vector<8x128xf32>
    %cst_39 = arith.constant 1.000000e+00 : f32
    %140 = vector.broadcast %cst_39 : f32 to vector<8x128xf32>
    %141 = arith.addf %140, %139 : vector<8x128xf32>
    %142 = arith.divf %140, %141 : vector<8x128xf32>
    %143 = vector.extract_strided_slice %124 {offsets = [0, 256], sizes = [8, 128], strides = [1, 1]} : vector<8x384xf32> to vector<8x128xf32>
    %144 = vector.extract_strided_slice %126 {offsets = [0, 256], sizes = [8, 128], strides = [1, 1]} : vector<8x384xf32> to vector<8x128xf32>
    %145 = vector.broadcast %11 : vector<1x128xf32> to vector<8x128xf32>
    %146 = arith.addf %144, %145 : vector<8x128xf32>
    %147 = arith.mulf %134, %146 : vector<8x128xf32>
    %148 = arith.addf %143, %147 : vector<8x128xf32>
    %149 = math.tanh %148 : vector<8x128xf32>
    %cst_40 = arith.constant 1.000000e+00 : f32
    %150 = vector.broadcast %cst_40 : f32 to vector<8x128xf32>
    %151 = arith.subf %150, %142 : vector<8x128xf32>
    %152 = arith.mulf %151, %149 : vector<8x128xf32>
    %153 = arith.mulf %142, %118 : vector<8x128xf32>
    %154 = arith.addf %152, %153 : vector<8x128xf32>
    %155 = arith.index_cast %122 : i32 to index
    %c0_41 = arith.constant 0 : index
    %156 = vector.load %arg11[%155, %c0_41] : memref<64x128xf32, #tpu.memory_space<vmem>>, vector<8x128xf32>
    tpu.vector_store %arg11[%155, %c0_41], %154 {strides = array<i32>} : memref<64x128xf32, #tpu.memory_space<vmem>>, vector<8x128xf32>,
    %c4_i32 = arith.constant 4 : i32
    %c8_i32_42 = arith.constant 8 : i32
    %157 = arith.muli %c4_i32, %c8_i32_42 : i32
    %158 = tpu.assume_multiple %157, 8 : i32
    %159 = arith.index_cast %158 : i32 to index
    %c0_43 = arith.constant 0 : index
    %160 = vector.load %arg10[%159, %c0_43] : memref<64x384xf32, #tpu.memory_space<vmem>>, vector<8x384xf32>
    %161 = arith.truncf %154 : vector<8x128xf32> to vector<8x128xbf16>
    %cst_44 = arith.constant dense<0.000000e+00> : vector<8x384xf32>
    %162 = tpu.matmul %161, %10, %cst_44 {dimension_numbers = #tpu.dot_dimension_numbers<[1], [0], [0], [1], [0, 0, 1, 1], [], []>} : vector<8x128xbf16>, vector<128x384xbf16>, vector<8x384xf32> -> vector<8x384xf32>
    %163 = vector.extract_strided_slice %160 {offsets = [0, 0], sizes = [8, 128], strides = [1, 1]} : vector<8x384xf32> to vector<8x128xf32>
    %164 = vector.extract_strided_slice %162 {offsets = [0, 0], sizes = [8, 128], strides = [1, 1]} : vector<8x384xf32> to vector<8x128xf32>
    %165 = arith.addf %163, %164 : vector<8x128xf32>
    %166 = arith.negf %165 : vector<8x128xf32>
    %167 = math.exp %166 : vector<8x128xf32>
    %cst_45 = arith.constant 1.000000e+00 : f32
    %168 = vector.broadcast %cst_45 : f32 to vector<8x128xf32>
    %169 = arith.addf %168, %167 : vector<8x128xf32>
    %170 = arith.divf %168, %169 : vector<8x128xf32>
    %171 = vector.extract_strided_slice %160 {offsets = [0, 128], sizes = [8, 128], strides = [1, 1]} : vector<8x384xf32> to vector<8x128xf32>
    %172 = vector.extract_strided_slice %162 {offsets = [0, 128], sizes = [8, 128], strides = [1, 1]} : vector<8x384xf32> to vector<8x128xf32>
    %173 = arith.addf %171, %172 : vector<8x128xf32>
    %174 = arith.negf %173 : vector<8x128xf32>
    %175 = math.exp %174 : vector<8x128xf32>
    %cst_46 = arith.constant 1.000000e+00 : f32
    %176 = vector.broadcast %cst_46 : f32 to vector<8x128xf32>
    %177 = arith.addf %176, %175 : vector<8x128xf32>
    %178 = arith.divf %176, %177 : vector<8x128xf32>
    %179 = vector.extract_strided_slice %160 {offsets = [0, 256], sizes = [8, 128], strides = [1, 1]} : vector<8x384xf32> to vector<8x128xf32>
    %180 = vector.extract_strided_slice %162 {offsets = [0, 256], sizes = [8, 128], strides = [1, 1]} : vector<8x384xf32> to vector<8x128xf32>
    %181 = vector.broadcast %11 : vector<1x128xf32> to vector<8x128xf32>
    %182 = arith.addf %180, %181 : vector<8x128xf32>
    %183 = arith.mulf %170, %182 : vector<8x128xf32>
    %184 = arith.addf %179, %183 : vector<8x128xf32>
    %185 = math.tanh %184 : vector<8x128xf32>
    %cst_47 = arith.constant 1.000000e+00 : f32
    %186 = vector.broadcast %cst_47 : f32 to vector<8x128xf32>
    %187 = arith.subf %186, %178 : vector<8x128xf32>
    %188 = arith.mulf %187, %185 : vector<8x128xf32>
    %189 = arith.mulf %178, %154 : vector<8x128xf32>
    %190 = arith.addf %188, %189 : vector<8x128xf32>
    %191 = arith.index_cast %158 : i32 to index
    %c0_48 = arith.constant 0 : index
    %192 = vector.load %arg11[%191, %c0_48] : memref<64x128xf32, #tpu.memory_space<vmem>>, vector<8x128xf32>
    tpu.vector_store %arg11[%191, %c0_48], %190 {strides = array<i32>} : memref<64x128xf32, #tpu.memory_space<vmem>>, vector<8x128xf32>,
    %c5_i32 = arith.constant 5 : i32
    %c8_i32_49 = arith.constant 8 : i32
    %193 = arith.muli %c5_i32, %c8_i32_49 : i32
    %194 = tpu.assume_multiple %193, 8 : i32
    %195 = arith.index_cast %194 : i32 to index
    %c0_50 = arith.constant 0 : index
    %196 = vector.load %arg10[%195, %c0_50] : memref<64x384xf32, #tpu.memory_space<vmem>>, vector<8x384xf32>
    %197 = arith.truncf %190 : vector<8x128xf32> to vector<8x128xbf16>
    %cst_51 = arith.constant dense<0.000000e+00> : vector<8x384xf32>
    %198 = tpu.matmul %197, %10, %cst_51 {dimension_numbers = #tpu.dot_dimension_numbers<[1], [0], [0], [1], [0, 0, 1, 1], [], []>} : vector<8x128xbf16>, vector<128x384xbf16>, vector<8x384xf32> -> vector<8x384xf32>
    %199 = vector.extract_strided_slice %196 {offsets = [0, 0], sizes = [8, 128], strides = [1, 1]} : vector<8x384xf32> to vector<8x128xf32>
    %200 = vector.extract_strided_slice %198 {offsets = [0, 0], sizes = [8, 128], strides = [1, 1]} : vector<8x384xf32> to vector<8x128xf32>
    %201 = arith.addf %199, %200 : vector<8x128xf32>
    %202 = arith.negf %201 : vector<8x128xf32>
    %203 = math.exp %202 : vector<8x128xf32>
    %cst_52 = arith.constant 1.000000e+00 : f32
    %204 = vector.broadcast %cst_52 : f32 to vector<8x128xf32>
    %205 = arith.addf %204, %203 : vector<8x128xf32>
    %206 = arith.divf %204, %205 : vector<8x128xf32>
    %207 = vector.extract_strided_slice %196 {offsets = [0, 128], sizes = [8, 128], strides = [1, 1]} : vector<8x384xf32> to vector<8x128xf32>
    %208 = vector.extract_strided_slice %198 {offsets = [0, 128], sizes = [8, 128], strides = [1, 1]} : vector<8x384xf32> to vector<8x128xf32>
    %209 = arith.addf %207, %208 : vector<8x128xf32>
    %210 = arith.negf %209 : vector<8x128xf32>
    %211 = math.exp %210 : vector<8x128xf32>
    %cst_53 = arith.constant 1.000000e+00 : f32
    %212 = vector.broadcast %cst_53 : f32 to vector<8x128xf32>
    %213 = arith.addf %212, %211 : vector<8x128xf32>
    %214 = arith.divf %212, %213 : vector<8x128xf32>
    %215 = vector.extract_strided_slice %196 {offsets = [0, 256], sizes = [8, 128], strides = [1, 1]} : vector<8x384xf32> to vector<8x128xf32>
    %216 = vector.extract_strided_slice %198 {offsets = [0, 256], sizes = [8, 128], strides = [1, 1]} : vector<8x384xf32> to vector<8x128xf32>
    %217 = vector.broadcast %11 : vector<1x128xf32> to vector<8x128xf32>
    %218 = arith.addf %216, %217 : vector<8x128xf32>
    %219 = arith.mulf %206, %218 : vector<8x128xf32>
    %220 = arith.addf %215, %219 : vector<8x128xf32>
    %221 = math.tanh %220 : vector<8x128xf32>
    %cst_54 = arith.constant 1.000000e+00 : f32
    %222 = vector.broadcast %cst_54 : f32 to vector<8x128xf32>
    %223 = arith.subf %222, %214 : vector<8x128xf32>
    %224 = arith.mulf %223, %221 : vector<8x128xf32>
    %225 = arith.mulf %214, %190 : vector<8x128xf32>
    %226 = arith.addf %224, %225 : vector<8x128xf32>
    %227 = arith.index_cast %194 : i32 to index
    %c0_55 = arith.constant 0 : index
    %228 = vector.load %arg11[%227, %c0_55] : memref<64x128xf32, #tpu.memory_space<vmem>>, vector<8x128xf32>
    tpu.vector_store %arg11[%227, %c0_55], %226 {strides = array<i32>} : memref<64x128xf32, #tpu.memory_space<vmem>>, vector<8x128xf32>,
    %c6_i32 = arith.constant 6 : i32
    %c8_i32_56 = arith.constant 8 : i32
    %229 = arith.muli %c6_i32, %c8_i32_56 : i32
    %230 = tpu.assume_multiple %229, 8 : i32
    %231 = arith.index_cast %230 : i32 to index
    %c0_57 = arith.constant 0 : index
    %232 = vector.load %arg10[%231, %c0_57] : memref<64x384xf32, #tpu.memory_space<vmem>>, vector<8x384xf32>
    %233 = arith.truncf %226 : vector<8x128xf32> to vector<8x128xbf16>
    %cst_58 = arith.constant dense<0.000000e+00> : vector<8x384xf32>
    %234 = tpu.matmul %233, %10, %cst_58 {dimension_numbers = #tpu.dot_dimension_numbers<[1], [0], [0], [1], [0, 0, 1, 1], [], []>} : vector<8x128xbf16>, vector<128x384xbf16>, vector<8x384xf32> -> vector<8x384xf32>
    %235 = vector.extract_strided_slice %232 {offsets = [0, 0], sizes = [8, 128], strides = [1, 1]} : vector<8x384xf32> to vector<8x128xf32>
    %236 = vector.extract_strided_slice %234 {offsets = [0, 0], sizes = [8, 128], strides = [1, 1]} : vector<8x384xf32> to vector<8x128xf32>
    %237 = arith.addf %235, %236 : vector<8x128xf32>
    %238 = arith.negf %237 : vector<8x128xf32>
    %239 = math.exp %238 : vector<8x128xf32>
    %cst_59 = arith.constant 1.000000e+00 : f32
    %240 = vector.broadcast %cst_59 : f32 to vector<8x128xf32>
    %241 = arith.addf %240, %239 : vector<8x128xf32>
    %242 = arith.divf %240, %241 : vector<8x128xf32>
    %243 = vector.extract_strided_slice %232 {offsets = [0, 128], sizes = [8, 128], strides = [1, 1]} : vector<8x384xf32> to vector<8x128xf32>
    %244 = vector.extract_strided_slice %234 {offsets = [0, 128], sizes = [8, 128], strides = [1, 1]} : vector<8x384xf32> to vector<8x128xf32>
    %245 = arith.addf %243, %244 : vector<8x128xf32>
    %246 = arith.negf %245 : vector<8x128xf32>
    %247 = math.exp %246 : vector<8x128xf32>
    %cst_60 = arith.constant 1.000000e+00 : f32
    %248 = vector.broadcast %cst_60 : f32 to vector<8x128xf32>
    %249 = arith.addf %248, %247 : vector<8x128xf32>
    %250 = arith.divf %248, %249 : vector<8x128xf32>
    %251 = vector.extract_strided_slice %232 {offsets = [0, 256], sizes = [8, 128], strides = [1, 1]} : vector<8x384xf32> to vector<8x128xf32>
    %252 = vector.extract_strided_slice %234 {offsets = [0, 256], sizes = [8, 128], strides = [1, 1]} : vector<8x384xf32> to vector<8x128xf32>
    %253 = vector.broadcast %11 : vector<1x128xf32> to vector<8x128xf32>
    %254 = arith.addf %252, %253 : vector<8x128xf32>
    %255 = arith.mulf %242, %254 : vector<8x128xf32>
    %256 = arith.addf %251, %255 : vector<8x128xf32>
    %257 = math.tanh %256 : vector<8x128xf32>
    %cst_61 = arith.constant 1.000000e+00 : f32
    %258 = vector.broadcast %cst_61 : f32 to vector<8x128xf32>
    %259 = arith.subf %258, %250 : vector<8x128xf32>
    %260 = arith.mulf %259, %257 : vector<8x128xf32>
    %261 = arith.mulf %250, %226 : vector<8x128xf32>
    %262 = arith.addf %260, %261 : vector<8x128xf32>
    %263 = arith.index_cast %230 : i32 to index
    %c0_62 = arith.constant 0 : index
    %264 = vector.load %arg11[%263, %c0_62] : memref<64x128xf32, #tpu.memory_space<vmem>>, vector<8x128xf32>
    tpu.vector_store %arg11[%263, %c0_62], %262 {strides = array<i32>} : memref<64x128xf32, #tpu.memory_space<vmem>>, vector<8x128xf32>,
    %c7_i32 = arith.constant 7 : i32
    %c8_i32_63 = arith.constant 8 : i32
    %265 = arith.muli %c7_i32, %c8_i32_63 : i32
    %266 = tpu.assume_multiple %265, 8 : i32
    %267 = arith.index_cast %266 : i32 to index
    %c0_64 = arith.constant 0 : index
    %268 = vector.load %arg10[%267, %c0_64] : memref<64x384xf32, #tpu.memory_space<vmem>>, vector<8x384xf32>
    %269 = arith.truncf %262 : vector<8x128xf32> to vector<8x128xbf16>
    %cst_65 = arith.constant dense<0.000000e+00> : vector<8x384xf32>
    %270 = tpu.matmul %269, %10, %cst_65 {dimension_numbers = #tpu.dot_dimension_numbers<[1], [0], [0], [1], [0, 0, 1, 1], [], []>} : vector<8x128xbf16>, vector<128x384xbf16>, vector<8x384xf32> -> vector<8x384xf32>
    %271 = vector.extract_strided_slice %268 {offsets = [0, 0], sizes = [8, 128], strides = [1, 1]} : vector<8x384xf32> to vector<8x128xf32>
    %272 = vector.extract_strided_slice %270 {offsets = [0, 0], sizes = [8, 128], strides = [1, 1]} : vector<8x384xf32> to vector<8x128xf32>
    %273 = arith.addf %271, %272 : vector<8x128xf32>
    %274 = arith.negf %273 : vector<8x128xf32>
    %275 = math.exp %274 : vector<8x128xf32>
    %cst_66 = arith.constant 1.000000e+00 : f32
    %276 = vector.broadcast %cst_66 : f32 to vector<8x128xf32>
    %277 = arith.addf %276, %275 : vector<8x128xf32>
    %278 = arith.divf %276, %277 : vector<8x128xf32>
    %279 = vector.extract_strided_slice %268 {offsets = [0, 128], sizes = [8, 128], strides = [1, 1]} : vector<8x384xf32> to vector<8x128xf32>
    %280 = vector.extract_strided_slice %270 {offsets = [0, 128], sizes = [8, 128], strides = [1, 1]} : vector<8x384xf32> to vector<8x128xf32>
    %281 = arith.addf %279, %280 : vector<8x128xf32>
    %282 = arith.negf %281 : vector<8x128xf32>
    %283 = math.exp %282 : vector<8x128xf32>
    %cst_67 = arith.constant 1.000000e+00 : f32
    %284 = vector.broadcast %cst_67 : f32 to vector<8x128xf32>
    %285 = arith.addf %284, %283 : vector<8x128xf32>
    %286 = arith.divf %284, %285 : vector<8x128xf32>
    %287 = vector.extract_strided_slice %268 {offsets = [0, 256], sizes = [8, 128], strides = [1, 1]} : vector<8x384xf32> to vector<8x128xf32>
    %288 = vector.extract_strided_slice %270 {offsets = [0, 256], sizes = [8, 128], strides = [1, 1]} : vector<8x384xf32> to vector<8x128xf32>
    %289 = vector.broadcast %11 : vector<1x128xf32> to vector<8x128xf32>
    %290 = arith.addf %288, %289 : vector<8x128xf32>
    %291 = arith.mulf %278, %290 : vector<8x128xf32>
    %292 = arith.addf %287, %291 : vector<8x128xf32>
    %293 = math.tanh %292 : vector<8x128xf32>
    %cst_68 = arith.constant 1.000000e+00 : f32
    %294 = vector.broadcast %cst_68 : f32 to vector<8x128xf32>
    %295 = arith.subf %294, %286 : vector<8x128xf32>
    %296 = arith.mulf %295, %293 : vector<8x128xf32>
    %297 = arith.mulf %286, %262 : vector<8x128xf32>
    %298 = arith.addf %296, %297 : vector<8x128xf32>
    %299 = arith.index_cast %266 : i32 to index
    %c0_69 = arith.constant 0 : index
    %300 = vector.load %arg11[%299, %c0_69] : memref<64x128xf32, #tpu.memory_space<vmem>>, vector<8x128xf32>
    tpu.vector_store %arg11[%299, %c0_69], %298 {strides = array<i32>} : memref<64x128xf32, #tpu.memory_space<vmem>>, vector<8x128xf32>,
    %c8_i32_70 = arith.constant 8 : i32
    %c0_71 = arith.constant 0 : index
    %c0_72 = arith.constant 0 : index
    %301 = vector.load %arg9[%c0_71, %c0_72] : memref<8x128xf32, #tpu.memory_space<vmem>>, vector<8x128xf32>
    tpu.vector_store %arg9[%c0_71, %c0_72], %298 {strides = array<i32>} : memref<8x128xf32, #tpu.memory_space<vmem>>, vector<8x128xf32>,
    %c0_73 = arith.constant 0 : index
    %c0_74 = arith.constant 0 : index
    %302 = vector.load %arg11[%c0_73, %c0_74] : memref<64x128xf32, #tpu.memory_space<vmem>>, vector<64x128xf32>
    %303 = arith.truncf %302 : vector<64x128xf32> to vector<64x128xbf16>
    %c0_75 = arith.constant 0 : index
    %c0_76 = arith.constant 0 : index
    %304 = vector.load %arg6[%c0_75, %c0_76] : memref<128x8xbf16, #tpu.memory_space<vmem>>, vector<128x8xbf16>
    %cst_77 = arith.constant dense<0.000000e+00> : vector<64x8xf32>
    %305 = tpu.matmul %303, %304, %cst_77 {dimension_numbers = #tpu.dot_dimension_numbers<[1], [0], [0], [1], [0, 0, 1, 1], [], []>} : vector<64x128xbf16>, vector<128x8xbf16>, vector<64x8xf32> -> vector<64x8xf32>
    %c0_78 = arith.constant 0 : index
    %c0_79 = arith.constant 0 : index
    %306 = vector.load %arg7[%c0_78, %c0_79] : memref<1x8xf32, #tpu.memory_space<vmem>>, vector<1x8xf32>
    %307 = vector.broadcast %306 : vector<1x8xf32> to vector<64x8xf32>
    %308 = arith.addf %305, %307 : vector<64x8xf32>
    %c0_80 = arith.constant 0 : index
    %c0_81 = arith.constant 0 : index
    %309 = vector.load %arg8[%c0_80, %c0_81] : memref<64x8xf32, #tpu.memory_space<vmem>>, vector<64x8xf32>
    tpu.vector_store %arg8[%c0_80, %c0_81], %308 {strides = array<i32>} : memref<64x8xf32, #tpu.memory_space<vmem>>, vector<64x8xf32>,
    return
  }
  func.func @transform_0(%arg0: i32) -> (i32, i32) {
    %c0_i32 = arith.constant 0 : i32
    %c0_i32_0 = arith.constant 0 : i32
    return %arg0, %c0_i32 : i32, i32
  }
  func.func @transform_1(%arg0: i32) -> (i32, i32) {
    %c0_i32 = arith.constant 0 : i32
    %c0_i32_0 = arith.constant 0 : i32
    %c0_i32_1 = arith.constant 0 : i32
    return %c0_i32, %c0_i32_0 : i32, i32
  }
  func.func @transform_2(%arg0: i32) -> (i32, i32) {
    %c0_i32 = arith.constant 0 : i32
    %c0_i32_0 = arith.constant 0 : i32
    %c0_i32_1 = arith.constant 0 : i32
    return %c0_i32, %c0_i32_0 : i32, i32
  }
  func.func @transform_3(%arg0: i32) -> (i32, i32) {
    %c0_i32 = arith.constant 0 : i32
    %c0_i32_0 = arith.constant 0 : i32
    %c0_i32_1 = arith.constant 0 : i32
    return %c0_i32, %c0_i32_0 : i32, i32
  }
  func.func @transform_4(%arg0: i32) -> (i32, i32) {
    %c0_i32 = arith.constant 0 : i32
    %c0_i32_0 = arith.constant 0 : i32
    %c0_i32_1 = arith.constant 0 : i32
    return %c0_i32, %c0_i32_0 : i32, i32
  }
  func.func @transform_5(%arg0: i32) -> (i32, i32) {
    %c0_i32 = arith.constant 0 : i32
    %c0_i32_0 = arith.constant 0 : i32
    %c0_i32_1 = arith.constant 0 : i32
    return %c0_i32, %c0_i32_0 : i32, i32
  }
  func.func @transform_6(%arg0: i32) -> (i32, i32) {
    %c0_i32 = arith.constant 0 : i32
    %c0_i32_0 = arith.constant 0 : i32
    %c0_i32_1 = arith.constant 0 : i32
    return %c0_i32, %c0_i32_0 : i32, i32
  }
  func.func @transform_7(%arg0: i32) -> (i32, i32) {
    %c0_i32 = arith.constant 0 : i32
    %c0_i32_0 = arith.constant 0 : i32
    return %arg0, %c0_i32 : i32, i32
  }
  func.func @transform_8(%arg0: i32) -> (i32, i32) {
    %c0_i32 = arith.constant 0 : i32
    %c0_i32_0 = arith.constant 0 : i32
    %c0_i32_1 = arith.constant 0 : i32
    return %c0_i32, %c0_i32_0 : i32, i32
  }
}

</mosaic_0001>

<bundles_post_ra>
// kernel: tpu_custom_call.1
= control target key start
LH: loop header
LB: loop body
LE: loop exit
PB: predicated region body
PF: predicated region fallthrough
CT: control target
= control target key end

     0   :  { %14 = vsyncpa [#allocation5], 0  ;;  %s2719_s0 = inlined_call_operand.vmem [shape: bf16[64,16], index: 0, kind: input, shape index: {}]   ;;  %s2720_s1 = inlined_call_operand.vmem [shape: bf16[16,384], index: 1, kind: input, shape index: {}]   ;;  %s2721_s2 = inlined_call_operand.vmem [shape: f32[1,384], index: 2, kind: input, shape index: {}]   ;;  %s2722_s3 = inlined_call_operand.hbm [shape: bf16[128,384], index: 3, kind: input, shape index: {}]   ;;  %s2723_s4 = inlined_call_operand.vmem [shape: f32[1,128], index: 4, kind: input, shape index: {}]   ;;  %s2724_s5 = inlined_call_operand.vmem [shape: bf16[128,8], index: 5, kind: input, shape index: {}]   ;;  %s2725_s6 = inlined_call_operand.vmem [shape: f32[1,8], index: 6, kind: input, shape index: {}]   ;;  %s2726_s7 = inlined_call_operand.vmem [shape: f32[64,8], index: 7, kind: output, shape index: {0}]   ;;  %s2727_s8 = inlined_call_operand.hbm [shape: f32[8,128], index: 8, kind: output, shape index: {1}]  }
   0x1   :  { %15 = vsyncpa [#allocation6], 0  ;;  %s2083_s27 = smov [#allocation4]   ;;  %s2035_s9 = scalar_lea.hbm %s2722_s3, 3072 }
   0x2   :  { %s27_s28 = sshll.u32 %s2083_s27, 4  ;;  %p2036_p0 = scmp.ne.s32.totalorder %s2722_s3, %s2035_s9  ;;  %s28_s28 = int_to_ptr.vmem [resolvable:$true] %s27_s28 }
   0x3   :  { %p2039_p1 = scmp.lt.u32.totalorder %s2035_s9, %s2722_s3 }
   0x5   :  { %p2041_p2 = pnand %p2039_p1, %p2036_p0 }
   0x7   :  { %2044 = shalt.err (!%p2041_p2)
}
   0x8   :  { %s2045_s14 = scalar_lea.vmem %s28_s28, 3072  ;;  %p2050_p4 = scmp.lt.s32.totalorder %s28_s28, %s28_s28 }
   0x9   :  { %p2046_p3 = scmp.ne.s32.totalorder %s28_s28, %s2045_s14  ;;  %p2051_p5 = scmp.lt.s32.totalorder %s2045_s14, %s2045_s14 }
   0xb   :  { %p2052_p6 = por %p2051_p5, %p2050_p4 }
   0xd   :  { %p2053_p7 = pnand %p2052_p6, %p2046_p3 }
   0xf   :  { %2056 = shalt.err (!%p2053_p7)
}
  0x10   :  { %s2084_s15 = smov 192   ;;  %s2085_s16 = smov 12  }
  0x11   :  { %33 = dma.hbm_to_vmem [thread:$0]  %s2722_s3, 3072, %s28_s28, [#allocation5], %s2084_s15, %s2084_s15, %s2085_s16  }
  0x12   :  { %2079 = dma.done.wait [#allocation5], 3072  }
  0x13   :  { %2080 = vsyncadd [#allocation5], 4294964224  ;;  %v2728_v0 = vmov 0   ;;  %vm114_vm0 = vcmask 130048   ;;  %v1891_v1 = vld [vmem:[%s2720_s1 + $0x8] ss:$12 sps:$4 sm:$0xff]   ;;  %v63_v34 = vlaneseq }
  0x14   :  { %159 = vmatprep.mubr.bf16.mxu0 %v2728_v0  ;;  %v1892_v2 = vld [vmem:[%s2719_s0] sm:$0xff]   ;;  %1690 = vmatprep.subr.bf16.mxu1 %v1891_v1  ;;  %v1893_v3 = vld [vmem:[%s2719_s0 + $0x8] sm:$0xff]   ;;  %v2173_v9 = vld [vmem:[#allocation4 + $0x30] ss:$12 sps:$4 sm:$0xff]   ;;  %v2730_v25 = vmov 0.0   ;;  %v2088_v26 = vmov 0.0|0.0  }
  0x15   :  { %1691 = vmatpush3.bf16.msra.mxu1 %v1891_v1  ;;  %1692 = vmatprep.mubr.msk.bf16.mxu1 %vm114_vm0, %v1892_v2  ;;  %v2159_v4 = vld [vmem:[#allocation4 + $0x4] ss:$12 sps:$4 sm:$0xff]   ;;  %v2161_v5 = vld [vmem:[#allocation4] ss:$12 sps:$4 sm:$0xff]   ;;  %v2164_v6 = vld [vmem:[#allocation4 + $0x1c] ss:$12 sps:$4 sm:$0xff]  }
  0x16   :  { %458 = vmatprep.subr.bf16.mxu1 %v2159_v4  ;;  %v2168_v7 = vld [vmem:[#allocation4 + $0x18] ss:$12 sps:$4 sm:$0xff]   ;;  %v2171_v8 = vld [vmem:[#allocation4 + $0x34] ss:$12 sps:$4 sm:$0xff]   ;;  %v2205_v18 = vld [vmem:[#allocation4 + $0x7c] ss:$12 sps:$4 sm:$0xff]  }
  0x17   :  { %v2176_v10 = vld [vmem:[#allocation4 + $0x4c] ss:$12 sps:$4 sm:$0xff]   ;;  %v1911_v11 = vld [vmem:[%s2719_s0 + $0x10] sm:$0xff]   ;;  %vm2089_vm1 = vmmov 0   ;;  %v64_v35 = vshrl.u32 %v63_v34, 7  ;;  %vm1501_vm2 = vcmask 64512  }
  0x18   :  { %1693 = vmatmul.mubr.msk.bf16.vlgmr.msra.gmra.mrb[0].mxu1 %vm114_vm0, %v1893_v3  ;;  %v1913_v12 = vld [vmem:[%s2719_s0 + $0x18] sm:$0xff]   ;;  %v2186_v13 = vld [vmem:[#allocation4 + $0x48] ss:$12 sps:$4 sm:$0xff]   ;;  %v1917_v14 = vld [vmem:[%s2720_s1 + $0x4] ss:$12 sps:$4 sm:$0xff]  }
  0x19   :  { %459 = vmatpush1.bf16.msra.mxu1 %v2161_v5  ;;  %1696 = vmatprep.mubr.msk.bf16.mxu1 %vm114_vm0, %v1911_v11  ;;  %v1919_v15 = vld [vmem:[%s2720_s1] ss:$12 sps:$4 sm:$0xff]   ;;  %v2198_v16 = vld [vmem:[#allocation4 + $0x64] ss:$12 sps:$4 sm:$0xff]   ;;  %v2229_v23 = vld [vmem:[#allocation4 + $0xa8] ss:$12 sps:$4 sm:$0xff]  }
  0x1a   :  { %460 = vmatprep.subr.bf16.mxu1 %v2164_v6  ;;  %127 = vmatprep.subr.bf16.mxu0 %v1917_v14  ;;  %v2201_v17 = vld [vmem:[#allocation4 + $0x60] ss:$12 sps:$4 sm:$0xff]   ;;  %v2211_v19 = vld [vmem:[#allocation4 + $0x78] ss:$12 sps:$4 sm:$0xff]   ;;  %v2217_v21 = vld [vmem:[#allocation4 + $0x90] ss:$12 sps:$4 sm:$0xff]  }
  0x1b   :  { %128 = vmatpush1.bf16.msra.mxu0 %v1919_v15  ;;  %v2215_v20 = vld [vmem:[#allocation4 + $0x94] ss:$12 sps:$4 sm:$0xff]   ;;  %v2219_v22 = vld [vmem:[#allocation4 + $0xac] ss:$12 sps:$4 sm:$0xff]   ;;  %v2259_v29 = vld [vmem:[#allocation4 + $0x50] ss:$12 sps:$4 sm:$0xff]  }
  0x1c   :  { %575 = vmatprep.subr.bf16.mxu0 %v2159_v4  ;;  %v2235_v24 = vld [vmem:[#allocation4 + $0x8] ss:$12 sps:$4 sm:$0xff]   ;;  %v2242_v27 = vld [vmem:[#allocation4 + $0x20] ss:$12 sps:$4 sm:$0xff]   ;;  %v2251_v28 = vld [vmem:[#allocation4 + $0x38] ss:$12 sps:$4 sm:$0xff]  }
  0x1d   :  { %461 = vmatpush1.bf16.msra.mxu1 %v2168_v7  ;;  %v2265_v30 = vld [vmem:[#allocation4 + $0x68] ss:$12 sps:$4 sm:$0xff]   ;;  %v2270_v31 = vld [vmem:[#allocation4 + $0x80] ss:$12 sps:$4 sm:$0xff]   ;;  %v2274_v32 = vld [vmem:[#allocation4 + $0x98] ss:$12 sps:$4 sm:$0xff]  }
  0x1e   :  { %462 = vmatprep.subr.bf16.mxu1 %v2171_v8  ;;  %1543 = vmatmul.mubr.msk.bf16.vlgmr.msra.gmra.mrb[0].mxu0 %vm114_vm0, %v1892_v2  ;;  %v2278_v33 = vld [vmem:[#allocation4 + $0xb0] ss:$12 sps:$4 sm:$0xff]   ;;  %v73_v36 = vsub.s32 2, %v64_v35  ;;  %v61_v37 = vld [vmem:[%s2721_s2] sm:$0x7]  ;;  %v65_v54 = vsub.s32 0, %v64_v35 }
  0x1f   :  { %576 = vmatpush1.bf16.msra.mxu0 %v2161_v5  ;;  %169 = vmatprep.mubr.bf16.mxu0 %v2728_v0  ;;  %v69_v55 = vsub.s32 1, %v64_v35  ;;  %s2090_s1 = smov [#allocation7]  }
  0x20   :  { %1697 = vmatmul.mubr.msk.bf16.gmra.mrb[4].mxu1 %vm114_vm0, %v1913_v12  ;;  %577 = vmatprep.subr.bf16.mxu0 %v2164_v6  ;;  %v2304_v38 = vrot.slane %v61_v37, %v73_v36  ;;  %v66_v57 = vrot.slane %v61_v37, %v65_v54  ;;  %s1518_s2 = sshll.u32 %s2090_s1, 4  ;;  %s1519_s2 = int_to_ptr.vmem [resolvable:$true] %s1518_s2 }
  0x21   :  { %463 = vmatpush1.bf16.msra.mxu1 %v2173_v9  ;;  %490 = vmatprep.mubr.bf16.mxu1 %v2728_v0  ;;  %v70_v59 = vrot.slane %v61_v37, %v69_v55  ;;  %s2057_s10 = scalar_lea.vmem %s1519_s2, 128  ;;  %p2062_p9 = scmp.lt.s32.totalorder %s1519_s2, %s1519_s2 }
  0x22   :  { %464 = vmatprep.subr.bf16.mxu1 %v2176_v10  ;;  %p2058_p8 = scmp.ne.s32.totalorder %s1519_s2, %s2057_s10  ;;  %p2063_p10 = scmp.lt.s32.totalorder %s2057_s10, %s2057_s10 }
  0x23   :  { %578 = vmatpush1.bf16.msra.mxu0 %v2168_v7 }
  0x24   :  { %579 = vmatprep.subr.bf16.mxu0 %v2171_v8  ;;  %p2064_p11 = por %p2063_p10, %p2062_p9 }
  0x25   :  { %465 = vmatpush1.bf16.msra.mxu1 %v2186_v13 }
  0x26   :  { %466 = vmatprep.subr.bf16.mxu1 %v2198_v16  ;;  %1544 = vmatmul.mubr.msk.bf16.gmra.mrb[4].mxu0 %vm114_vm0, %v1893_v3  ;;  %p2065_p12 = pnand %p2064_p11, %p2058_p8 }
  0x27   :  { %580 = vmatpush1.bf16.msra.mxu0 %v2173_v9  ;;  %179 = vmatprep.mubr.bf16.mxu0 %v2728_v0 }
  0x28   :  { %581 = vmatprep.subr.bf16.mxu0 %v2176_v10 }
  0x29   :  { %467 = vmatpush1.bf16.msra.mxu1 %v2201_v17 }
  0x2a   :  { %468 = vmatprep.subr.bf16.mxu1 %v2205_v18 }
  0x2b   :  { %582 = vmatpush1.bf16.msra.mxu0 %v2186_v13 }
  0x2c   :  { %583 = vmatprep.subr.bf16.mxu0 %v2198_v16 }
  0x2d   :  { %469 = vmatpush1.bf16.msra.mxu1 %v2211_v19 }
  0x2e   :  { %470 = vmatprep.subr.bf16.mxu1 %v2215_v20  ;;  %1545 = vmatmul.mubr.msk.bf16.gmra.mrb[8].mxu0 %vm114_vm0, %v1911_v11 }
  0x2f   :  { %584 = vmatpush1.bf16.msra.mxu0 %v2201_v17  ;;  %189 = vmatprep.mubr.bf16.mxu0 %v2728_v0 }
  0x30   :  { %585 = vmatprep.subr.bf16.mxu0 %v2205_v18 }
  0x31   :  { %471 = vmatpush1.bf16.msra.mxu1 %v2217_v21 }
  0x32   :  { %472 = vmatprep.subr.bf16.mxu1 %v2219_v22 }
  0x33   :  { %586 = vmatpush1.bf16.msra.mxu0 %v2211_v19 }
  0x34   :  { %587 = vmatprep.subr.bf16.mxu0 %v2215_v20 }
  0x35   :  { %473 = vmatpush1.bf16.msra.mxu1 %v2229_v23 }
  0x36   :  { %1700 = vmatprep.subr.bf16.mxu1 %v2730_v25  ;;  %1546 = vmatmul.mubr.msk.bf16.gmra.mrb[12].mxu0 %vm114_vm0, %v1913_v12 }
  0x37   :  { %588 = vmatpush1.bf16.msra.mxu0 %v2217_v21  ;;  %607 = vmatprep.mubr.bf16.mxu0 %v2728_v0 }
  0x38   :  { %491 = vmatmul.mubr.bf16.vlgmr.msra.gmra.mrb[8].mxu1 %v2088_v26  ;;  %589 = vmatprep.subr.bf16.mxu0 %v2219_v22 }
  0x39   :  { %1701 = vmatpush3.bf16.msra.mxu1 %v2235_v24  ;;  %1716 = vmatprep.mubr.msk.bf16.mxu1 %vm2089_vm1, %v2730_v25 }
  0x3a   :  { %1702 = vmatprep.subr.bf16.mxu1 %v2730_v25 }
  0x3b   :  { %590 = vmatpush1.bf16.msra.mxu0 %v2229_v23 }
  0x3c   :  { %687 = vmatprep.subr.bf16.mxu0 %v2159_v4 }
  0x3d   :  { %1703 = vmatpush3.bf16.msra.mxu1 %v2242_v27 }
  0x3e   :  { %1704 = vmatprep.subr.bf16.mxu1 %v2730_v25 }
  0x41   :  { %1705 = vmatpush3.bf16.msra.mxu1 %v2251_v28 }
  0x42   :  { %1706 = vmatprep.subr.bf16.mxu1 %v2730_v25 }
  0x45   :  { %1707 = vmatpush3.bf16.msra.mxu1 %v2259_v29 }
  0x46   :  { %1708 = vmatprep.subr.bf16.mxu1 %v2730_v25 }
  0x49   :  { %1709 = vmatpush3.bf16.msra.mxu1 %v2265_v30 }
  0x4a   :  { %1710 = vmatprep.subr.bf16.mxu1 %v2730_v25 }
  0x4d   :  { %1711 = vmatpush3.bf16.msra.mxu1 %v2270_v31 }
  0x4e   :  { %1712 = vmatprep.subr.bf16.mxu1 %v2730_v25 }
  0x51   :  { %1713 = vmatpush3.bf16.msra.mxu1 %v2274_v32 }
  0x52   :  { %1714 = vmatprep.subr.bf16.mxu1 %v2730_v25 }
  0x55   :  { %1715 = vmatpush3.bf16.msra.mxu1 %v2278_v33 }
  0x56   :  { %1720 = vmatprep.subr.bf16.mxu1 %v2730_v25 }
  0x58   :  { %1717 = vmatmul.mubr.bf16.vlgmr.msra.gmra.mrb[12].mxu1 %v2088_v26 }
  0x59   :  { %1721 = vmatpush3.bf16.msra.mxu1 %v2235_v24  ;;  %1736 = vmatprep.mubr.msk.bf16.mxu1 %vm2089_vm1, %v2730_v25 }
  0x5a   :  { %1722 = vmatprep.subr.bf16.mxu1 %v2730_v25 }
  0x5d   :  { %1723 = vmatpush3.bf16.msra.mxu1 %v2242_v27 }
  0x5e   :  { %1724 = vmatprep.subr.bf16.mxu1 %v2730_v25 }
  0x61   :  { %1725 = vmatpush3.bf16.msra.mxu1 %v2251_v28 }
  0x62   :  { %1726 = vmatprep.subr.bf16.mxu1 %v2730_v25 }
  0x65   :  { %1727 = vmatpush3.bf16.msra.mxu1 %v2259_v29 }
  0x66   :  { %1728 = vmatprep.subr.bf16.mxu1 %v2730_v25 }
  0x69   :  { %1729 = vmatpush3.bf16.msra.mxu1 %v2265_v30 }
  0x6a   :  { %1730 = vmatprep.subr.bf16.mxu1 %v2730_v25 }
  0x6d   :  { %1731 = vmatpush3.bf16.msra.mxu1 %v2270_v31 }
  0x6e   :  { %1732 = vmatprep.subr.bf16.mxu1 %v2730_v25 }
  0x71   :  { %1733 = vmatpush3.bf16.msra.mxu1 %v2274_v32 }
  0x72   :  { %1734 = vmatprep.subr.bf16.mxu1 %v2730_v25 }
  0x75   :  { %1735 = vmatpush3.bf16.msra.mxu1 %v2278_v33 }
  0x76   :  { %1740 = vmatprep.subr.bf16.mxu1 %v2730_v25 }
  0xeb   :  { %v1694_v39 = vpop.f32.mrb[0].mxu1 }
  0xec   :  { %v2307_v40 = vadd.f32 %v1694_v39, %v2304_v38  ;;  %v2309_v41 = vpop.f32.mrb[1].mxu1 }
  0xed   :  { %v1695_v42 = vpop.f32.mrb[2].mxu1 }
  0xee   :  { %v2312_v43 = vadd.f32 %v1695_v42, %v2304_v38  ;;  %v237_v44 = vpop.f32.mrb[3].mxu1 }
  0xef   :  { %v2315_v45 = vadd.f32 %v237_v44, %v2304_v38 }
  0xf1   :  { %v161_v56 = vpop.f32.mrb[0].mxu0 }
  0xf2   :  { %v163_v58 = vpop.f32.mrb[1].mxu0  ;;  %v162_v34 = vadd.f32 %v161_v56, %v66_v57 }
  0xf3   :  { %v1698_v46 = vpop.f32.mrb[4].mxu1  ;;  %v165_v60 = vpop.f32.mrb[2].mxu0  ;;  %v164_v35 = vadd.f32 %v163_v58, %v70_v59 }
  0xf4   :  { %v2318_v47 = vadd.f32 %v1698_v46, %v2304_v38  ;;  %v250_v48 = vpop.f32.mrb[5].mxu1  ;;  %v2329_v61 = vadd.f32 %v165_v60, %v66_v57  ;;  %v167_v62 = vpop.f32.mrb[3].mxu0 }
  0xf5   :  { %v2321_v49 = vadd.f32 %v250_v48, %v2304_v38  ;;  %v1699_v50 = vpop.f32.mrb[6].mxu1  ;;  %v2331_v63 = vadd.f32 %v167_v62, %v70_v59 }
  0xf6   :  { %v2324_v51 = vadd.f32 %v1699_v50, %v2304_v38  ;;  %v253_v52 = vpop.f32.mrb[7].mxu1 }
  0xf7   :  { %v2327_v53 = vadd.f32 %v253_v52, %v2304_v38 }
  0xf8   :  { %2732 = vst [vmem:[#allocation10_spill] sm:$0xff] %v2324_v51 }
  0xf9   :  { %v171_v1 = vpop.f32.mrb[4].mxu0 }
  0xfa   :  { %v2333_v2 = vadd.f32 %v171_v1, %v66_v57  ;;  %v173_v3 = vpop.f32.mrb[5].mxu0 }
  0xfb   :  { %v2335_v11 = vadd.f32 %v173_v3, %v70_v59  ;;  %v175_v12 = vpop.f32.mrb[6].mxu0 }
  0xfc   :  { %v2337_v14 = vadd.f32 %v175_v12, %v66_v57  ;;  %v177_v15 = vpop.f32.mrb[7].mxu0 }
  0xfd   :  { %v2339_v26 = vadd.f32 %v177_v15, %v70_v59 }
 0x101   :  { %v181_v36 = vpop.f32.mrb[8].mxu0 }
 0x102   :  { %v2341_v39 = vadd.f32 %v181_v36, %v66_v57  ;;  %v183_v42 = vpop.f32.mrb[9].mxu0 }
 0x103   :  { %v2343_v48 = vadd.f32 %v183_v42, %v70_v59  ;;  %v185_v50 = vpop.f32.mrb[10].mxu0 }
 0x104   :  { %v2345_v55 = vadd.f32 %v185_v50, %v66_v57  ;;  %v187_v60 = vpop.f32.mrb[11].mxu0 }
 0x105   :  { %v2347_v3 = vadd.f32 %v187_v60, %v70_v59 }
 0x109   :  { %v191_v56 = vpop.f32.mrb[12].mxu0 }
 0x10a   :  { %v2349_v58 = vadd.f32 %v191_v56, %v66_v57  ;;  %v193_v12 = vpop.f32.mrb[13].mxu0 }
 0x10b   :  { %v492_v37 = vpop.f32.mrb[8].mxu1  ;;  %v2351_v15 = vadd.f32 %v193_v12, %v70_v59 }
 0x10c   :  { %v539_v44 = vadd.f32 %v492_v37, %v162_v34  ;;  %v494_v46 = vpop.f32.mrb[9].mxu1  ;;  %v195_v34 = vpop.f32.mrb[14].mxu0 }
 0x10d   :  { %v546_v52 = vadd.f32 %v494_v46, %v164_v35  ;;  %v496_v54 = vpop.f32.mrb[10].mxu1  ;;  %v2353_v36 = vadd.f32 %v195_v34, %v66_v57  ;;  %v197_v37 = vpop.f32.mrb[15].mxu0 }
 0x10e   :  { %v1575_v62 = vmul.f32 -1.442695, %v539_v44  ;;  %v497_v1 = vpop.f32.mrb[11].mxu1  ;;  %v2355_v35 = vadd.f32 %v197_v37, %v70_v59  ;;  %v2360_v54 = vld [vmem:[%s2723_s4] ss:$0 sm:$0xff]  ;;  %v235_v59 = vadd.f32 %v2309_v41, %v2304_v38  ;;  %v2734_v38 = vmov 0.0  }
 0x10f   :  { %v1576_v42 = vmul.f32 -1.442695, %v546_v52  ;;  %v2735_v41 = vmov 0  }
 0x110   :  { %1939 = vpow2.f32 %v1575_v62  ;;  %2733 = vst [vmem:[#allocation11_spill] sm:$0xff] %v2355_v35 }
 0x111   :  { %1941 = vpow2.f32 %v1576_v42 }
 0x11a   :  { %v1940_v46 = vpop.eup %1939 }
 0x11b   :  { %v543_v44 = vadd.f32 1.0, %v1940_v46  ;;  %v1942_v50 = vpop.eup %1941 }
 0x11c   :  { %v550_v60 = vadd.f32 1.0, %v1942_v50 }
 0x11d   :  { %1943 = vrcp.f32 %v543_v44 }
 0x11e   :  { %1945 = vrcp.f32 %v550_v60 }
 0x127   :  { %v1944_v56 = vpop.eup %1943 }
 0x128   :  { %v1946_v42 = vpop.eup %1945 }
 0x129   :  { %v563_v46 = vsub.f32 1.0, %v1946_v42  ;;  %v565_v0 = vmul.f32 0.0, %v1946_v42 }
 0x12b   :  { %v533_v62 = vpop.f32.mrb[12].mxu1 }
 0x12c   :  { %v559_v1 = vadd.f32 %v2360_v54, %v533_v62  ;;  %v1718_v57 = vpop.f32.mrb[13].mxu1 }
 0x12d   :  { %v536_v12 = vpop.f32.mrb[14].mxu1 }
 0x12e   :  { %v560_v52 = vmul.f32 %v1944_v56, %v559_v1  ;;  %v1719_v34 = vpop.f32.mrb[15].mxu1 }
 0x130   :  { %v561_v37 = vadd.f32 %v560_v52, %v235_v59 }
 0x132   :  { %1947 = vtanh.f32 %v561_v37 }
 0x13c   :  { %v1948_v44 = vpop.eup %1947 }
 0x13d   :  { %v564_v25 = vmul.f32 %v1948_v44, %v563_v46 }
 0x13f   :  { %v2365_v50 = vadd.f32 %v565_v0, %v564_v25 }
 0x141   :  { %v574_v62 = vpack.c.bf16 %v2365_v50, %v2365_v50 }
 0x143   :  { %608 = vmatmul.mubr.bf16.vlgmr.msra.gmra.mrb[16].mxu0 %v574_v62  ;;  %1737 = vmatmul.mubr.bf16.vlgmr.msra.gmra.mrb[16].mxu1 %v574_v62 }
 0x144   :  { %688 = vmatpush1.bf16.msra.mxu0 %v2161_v5  ;;  %1741 = vmatpush3.bf16.msra.mxu1 %v2235_v24 }
 0x145   :  { %689 = vmatprep.subr.bf16.mxu0 %v2164_v6  ;;  %1742 = vmatprep.subr.bf16.mxu1 %v2734_v38 }
 0x146   :  { %719 = vmatprep.mubr.bf16.mxu0 %v2735_v41  ;;  %1756 = vmatprep.mubr.msk.bf16.mxu1 %vm2089_vm1, %v2734_v38 }
 0x148   :  { %690 = vmatpush1.bf16.msra.mxu0 %v2168_v7  ;;  %1743 = vmatpush3.bf16.msra.mxu1 %v2242_v27 }
 0x149   :  { %691 = vmatprep.subr.bf16.mxu0 %v2171_v8  ;;  %1744 = vmatprep.subr.bf16.mxu1 %v2734_v38 }
 0x14c   :  { %692 = vmatpush1.bf16.msra.mxu0 %v2173_v9  ;;  %1745 = vmatpush3.bf16.msra.mxu1 %v2251_v28 }
 0x14d   :  { %693 = vmatprep.subr.bf16.mxu0 %v2176_v10  ;;  %1746 = vmatprep.subr.bf16.mxu1 %v2734_v38 }
 0x150   :  { %694 = vmatpush1.bf16.msra.mxu0 %v2186_v13  ;;  %1747 = vmatpush3.bf16.msra.mxu1 %v2259_v29 }
 0x151   :  { %695 = vmatprep.subr.bf16.mxu0 %v2198_v16  ;;  %1748 = vmatprep.subr.bf16.mxu1 %v2734_v38 }
 0x154   :  { %696 = vmatpush1.bf16.msra.mxu0 %v2201_v17  ;;  %1749 = vmatpush3.bf16.msra.mxu1 %v2265_v30 }
 0x155   :  { %697 = vmatprep.subr.bf16.mxu0 %v2205_v18  ;;  %1750 = vmatprep.subr.bf16.mxu1 %v2734_v38 }
 0x158   :  { %698 = vmatpush1.bf16.msra.mxu0 %v2211_v19  ;;  %1751 = vmatpush3.bf16.msra.mxu1 %v2270_v31 }
 0x159   :  { %699 = vmatprep.subr.bf16.mxu0 %v2215_v20  ;;  %1752 = vmatprep.subr.bf16.mxu1 %v2734_v38 }
 0x15c   :  { %700 = vmatpush1.bf16.msra.mxu0 %v2217_v21  ;;  %1753 = vmatpush3.bf16.msra.mxu1 %v2274_v32 }
 0x15d   :  { %701 = vmatprep.subr.bf16.mxu0 %v2219_v22  ;;  %1754 = vmatprep.subr.bf16.mxu1 %v2734_v38 }
 0x160   :  { %702 = vmatpush1.bf16.msra.mxu0 %v2229_v23  ;;  %1755 = vmatpush3.bf16.msra.mxu1 %v2278_v33 }
 0x161   :  { %799 = vmatprep.subr.bf16.mxu0 %v2159_v4  ;;  %1760 = vmatprep.subr.bf16.mxu1 %v2734_v38 }
 0x216   :  { %v609_v0 = vpop.f32.mrb[16].mxu0  ;;  %v650_v25 = vpop.f32.mrb[16].mxu1 }
 0x217   :  { %v656_v60 = vadd.f32 %v609_v0, %v2329_v61  ;;  %v611_v1 = vpop.f32.mrb[17].mxu0  ;;  %v1738_v57 = vpop.f32.mrb[17].mxu1  ;;  %v670_v35 = vadd.f32 %v2360_v54, %v650_v25 }
 0x218   :  { %v663_v56 = vadd.f32 %v611_v1, %v2331_v63  ;;  %v613_v12 = vpop.f32.mrb[18].mxu0  ;;  %v653_v59 = vpop.f32.mrb[18].mxu1 }
 0x219   :  { %v1578_v52 = vmul.f32 -1.442695, %v656_v60  ;;  %v614_v34 = vpop.f32.mrb[19].mxu0  ;;  %v1739_v37 = vpop.f32.mrb[19].mxu1 }
 0x21a   :  { %v1579_v42 = vmul.f32 -1.442695, %v663_v56 }
 0x21b   :  { %1949 = vpow2.f32 %v1578_v52 }
 0x21c   :  { %1951 = vpow2.f32 %v1579_v42 }
 0x225   :  { %v1950_v46 = vpop.eup %1949 }
 0x226   :  { %v660_v44 = vadd.f32 1.0, %v1950_v46  ;;  %v1952_v62 = vpop.eup %1951 }
 0x227   :  { %v667_v51 = vadd.f32 1.0, %v1952_v62 }
 0x228   :  { %1953 = vrcp.f32 %v660_v44 }
 0x229   :  { %1955 = vrcp.f32 %v667_v51 }
 0x232   :  { %v1954_v61 = vpop.eup %1953 }
 0x233   :  { %v671_v0 = vmul.f32 %v1954_v61, %v670_v35  ;;  %v1956_v1 = vpop.eup %1955 }
 0x234   :  { %v674_v60 = vsub.f32 1.0, %v1956_v1  ;;  %v676_v56 = vmul.f32 %v1956_v1, %v2365_v50 }
 0x235   :  { %v672_v63 = vadd.f32 %v671_v0, %v2315_v45 }
 0x237   :  { %1957 = vtanh.f32 %v672_v63 }
 0x241   :  { %v1958_v57 = vpop.eup %1957 }
 0x242   :  { %v675_v12 = vmul.f32 %v1958_v57, %v674_v60 }
 0x244   :  { %v2409_v59 = vadd.f32 %v676_v56, %v675_v12 }
 0x246   :  { %v686_v52 = vpack.c.bf16 %v2409_v59, %v2409_v59 }
 0x248   :  { %720 = vmatmul.mubr.bf16.vlgmr.msra.gmra.mrb[20].mxu0 %v686_v52  ;;  %1757 = vmatmul.mubr.bf16.vlgmr.msra.gmra.mrb[20].mxu1 %v686_v52 }
 0x249   :  { %800 = vmatpush1.bf16.msra.mxu0 %v2161_v5  ;;  %1761 = vmatpush3.bf16.msra.mxu1 %v2235_v24 }
 0x24a   :  { %801 = vmatprep.subr.bf16.mxu0 %v2164_v6  ;;  %1762 = vmatprep.subr.bf16.mxu1 %v2734_v38 }
 0x24b   :  { %831 = vmatprep.mubr.bf16.mxu0 %v2735_v41  ;;  %1776 = vmatprep.mubr.msk.bf16.mxu1 %vm2089_vm1, %v2734_v38 }
 0x24d   :  { %802 = vmatpush1.bf16.msra.mxu0 %v2168_v7  ;;  %1763 = vmatpush3.bf16.msra.mxu1 %v2242_v27 }
 0x24e   :  { %803 = vmatprep.subr.bf16.mxu0 %v2171_v8  ;;  %1764 = vmatprep.subr.bf16.mxu1 %v2734_v38 }
 0x251   :  { %804 = vmatpush1.bf16.msra.mxu0 %v2173_v9  ;;  %1765 = vmatpush3.bf16.msra.mxu1 %v2251_v28 }
 0x252   :  { %805 = vmatprep.subr.bf16.mxu0 %v2176_v10  ;;  %1766 = vmatprep.subr.bf16.mxu1 %v2734_v38 }
 0x255   :  { %806 = vmatpush1.bf16.msra.mxu0 %v2186_v13  ;;  %1767 = vmatpush3.bf16.msra.mxu1 %v2259_v29 }
 0x256   :  { %807 = vmatprep.subr.bf16.mxu0 %v2198_v16  ;;  %1768 = vmatprep.subr.bf16.mxu1 %v2734_v38 }
 0x259   :  { %808 = vmatpush1.bf16.msra.mxu0 %v2201_v17  ;;  %1769 = vmatpush3.bf16.msra.mxu1 %v2265_v30 }
 0x25a   :  { %809 = vmatprep.subr.bf16.mxu0 %v2205_v18  ;;  %1770 = vmatprep.subr.bf16.mxu1 %v2734_v38 }
 0x25d   :  { %810 = vmatpush1.bf16.msra.mxu0 %v2211_v19  ;;  %1771 = vmatpush3.bf16.msra.mxu1 %v2270_v31 }
 0x25e   :  { %811 = vmatprep.subr.bf16.mxu0 %v2215_v20  ;;  %1772 = vmatprep.subr.bf16.mxu1 %v2734_v38 }
 0x261   :  { %812 = vmatpush1.bf16.msra.mxu0 %v2217_v21  ;;  %1773 = vmatpush3.bf16.msra.mxu1 %v2274_v32 }
 0x262   :  { %813 = vmatprep.subr.bf16.mxu0 %v2219_v22  ;;  %1774 = vmatprep.subr.bf16.mxu1 %v2734_v38 }
 0x265   :  { %814 = vmatpush1.bf16.msra.mxu0 %v2229_v23  ;;  %1775 = vmatpush3.bf16.msra.mxu1 %v2278_v33 }
 0x266   :  { %911 = vmatprep.subr.bf16.mxu0 %v2159_v4  ;;  %1780 = vmatprep.subr.bf16.mxu1 %v2734_v38 }
 0x31b   :  { %v721_v45 = vpop.f32.mrb[20].mxu0  ;;  %v762_v51 = vpop.f32.mrb[20].mxu1 }
 0x31c   :  { %v768_v35 = vadd.f32 %v721_v45, %v2333_v2  ;;  %v723_v25 = vpop.f32.mrb[21].mxu0  ;;  %v1758_v34 = vpop.f32.mrb[21].mxu1  ;;  %v782_v12 = vadd.f32 %v2360_v54, %v762_v51 }
 0x31d   :  { %v775_v37 = vadd.f32 %v723_v25, %v2335_v11  ;;  %v725_v42 = vpop.f32.mrb[22].mxu0  ;;  %v765_v46 = vpop.f32.mrb[22].mxu1 }
 0x31e   :  { %v1580_v44 = vmul.f32 -1.442695, %v768_v35  ;;  %v726_v62 = vpop.f32.mrb[23].mxu0  ;;  %v1759_v61 = vpop.f32.mrb[23].mxu1 }
 0x31f   :  { %v1581_v0 = vmul.f32 -1.442695, %v775_v37 }
 0x320   :  { %1959 = vpow2.f32 %v1580_v44 }
 0x321   :  { %1961 = vpow2.f32 %v1581_v0 }
 0x32a   :  { %v1960_v63 = vpop.eup %1959 }
 0x32b   :  { %v772_v1 = vadd.f32 1.0, %v1960_v63  ;;  %v1962_v60 = vpop.eup %1961 }
 0x32c   :  { %v779_v57 = vadd.f32 1.0, %v1962_v60 }
 0x32d   :  { %1963 = vrcp.f32 %v772_v1 }
 0x32e   :  { %1965 = vrcp.f32 %v779_v57 }
 0x337   :  { %v1964_v2 = vpop.eup %1963 }
 0x338   :  { %v783_v56 = vmul.f32 %v1964_v2, %v782_v12  ;;  %v1966_v52 = vpop.eup %1965 }
 0x339   :  { %v786_v45 = vsub.f32 1.0, %v1966_v52  ;;  %v788_v34 = vmul.f32 %v1966_v52, %v2409_v59 }
 0x33a   :  { %v784_v11 = vadd.f32 %v783_v56, %v2307_v40 }
 0x33c   :  { %1967 = vtanh.f32 %v784_v11 }
 0x346   :  { %v1968_v35 = vpop.eup %1967 }
 0x347   :  { %v787_v25 = vmul.f32 %v1968_v35, %v786_v45 }
 0x349   :  { %v2453_v37 = vadd.f32 %v788_v34, %v787_v25 }
 0x34b   :  { %v798_v42 = vpack.c.bf16 %v2453_v37, %v2453_v37 }
 0x34d   :  { %832 = vmatmul.mubr.bf16.vlgmr.msra.gmra.mrb[24].mxu0 %v798_v42  ;;  %1777 = vmatmul.mubr.bf16.vlgmr.msra.gmra.mrb[24].mxu1 %v798_v42 }
 0x34e   :  { %912 = vmatpush1.bf16.msra.mxu0 %v2161_v5  ;;  %1781 = vmatpush3.bf16.msra.mxu1 %v2235_v24 }
 0x34f   :  { %913 = vmatprep.subr.bf16.mxu0 %v2164_v6  ;;  %1782 = vmatprep.subr.bf16.mxu1 %v2734_v38 }
 0x350   :  { %943 = vmatprep.mubr.bf16.mxu0 %v2735_v41  ;;  %1796 = vmatprep.mubr.msk.bf16.mxu1 %vm2089_vm1, %v2734_v38 }
 0x352   :  { %914 = vmatpush1.bf16.msra.mxu0 %v2168_v7  ;;  %1783 = vmatpush3.bf16.msra.mxu1 %v2242_v27 }
 0x353   :  { %915 = vmatprep.subr.bf16.mxu0 %v2171_v8  ;;  %1784 = vmatprep.subr.bf16.mxu1 %v2734_v38 }
 0x356   :  { %916 = vmatpush1.bf16.msra.mxu0 %v2173_v9  ;;  %1785 = vmatpush3.bf16.msra.mxu1 %v2251_v28 }
 0x357   :  { %917 = vmatprep.subr.bf16.mxu0 %v2176_v10  ;;  %1786 = vmatprep.subr.bf16.mxu1 %v2734_v38 }
 0x35a   :  { %918 = vmatpush1.bf16.msra.mxu0 %v2186_v13  ;;  %1787 = vmatpush3.bf16.msra.mxu1 %v2259_v29 }
 0x35b   :  { %919 = vmatprep.subr.bf16.mxu0 %v2198_v16  ;;  %1788 = vmatprep.subr.bf16.mxu1 %v2734_v38 }
 0x35e   :  { %920 = vmatpush1.bf16.msra.mxu0 %v2201_v17  ;;  %1789 = vmatpush3.bf16.msra.mxu1 %v2265_v30 }
 0x35f   :  { %921 = vmatprep.subr.bf16.mxu0 %v2205_v18  ;;  %1790 = vmatprep.subr.bf16.mxu1 %v2734_v38 }
 0x362   :  { %922 = vmatpush1.bf16.msra.mxu0 %v2211_v19  ;;  %1791 = vmatpush3.bf16.msra.mxu1 %v2270_v31 }
 0x363   :  { %923 = vmatprep.subr.bf16.mxu0 %v2215_v20  ;;  %1792 = vmatprep.subr.bf16.mxu1 %v2734_v38 }
 0x366   :  { %924 = vmatpush1.bf16.msra.mxu0 %v2217_v21  ;;  %1793 = vmatpush3.bf16.msra.mxu1 %v2274_v32 }
 0x367   :  { %925 = vmatprep.subr.bf16.mxu0 %v2219_v22  ;;  %1794 = vmatprep.subr.bf16.mxu1 %v2734_v38 }
 0x36a   :  { %926 = vmatpush1.bf16.msra.mxu0 %v2229_v23  ;;  %1795 = vmatpush3.bf16.msra.mxu1 %v2278_v33 }
 0x36b   :  { %1023 = vmatprep.subr.bf16.mxu0 %v2159_v4  ;;  %1800 = vmatprep.subr.bf16.mxu1 %v2734_v38 }
 0x420   :  { %v833_v40 = vpop.f32.mrb[24].mxu0  ;;  %v874_v51 = vpop.f32.mrb[24].mxu1 }
 0x421   :  { %v880_v46 = vadd.f32 %v833_v40, %v2337_v14  ;;  %v835_v44 = vpop.f32.mrb[25].mxu0  ;;  %v1778_v62 = vpop.f32.mrb[25].mxu1  ;;  %v894_v45 = vadd.f32 %v2360_v54, %v874_v51 }
 0x422   :  { %v887_v61 = vadd.f32 %v835_v44, %v2339_v26  ;;  %v837_v0 = vpop.f32.mrb[26].mxu0  ;;  %v877_v63 = vpop.f32.mrb[26].mxu1 }
 0x423   :  { %v1582_v1 = vmul.f32 -1.442695, %v880_v46  ;;  %v838_v60 = vpop.f32.mrb[27].mxu0  ;;  %v1779_v57 = vpop.f32.mrb[27].mxu1 }
 0x424   :  { %v1583_v12 = vmul.f32 -1.442695, %v887_v61 }
 0x425   :  { %1969 = vpow2.f32 %v1582_v1 }
 0x426   :  { %1971 = vpow2.f32 %v1583_v12 }
 0x42f   :  { %v1970_v2 = vpop.eup %1969 }
 0x430   :  { %v884_v56 = vadd.f32 1.0, %v1970_v2  ;;  %v1972_v11 = vpop.eup %1971 }
 0x431   :  { %v891_v52 = vadd.f32 1.0, %v1972_v11 }
 0x432   :  { %1973 = vrcp.f32 %v884_v56 }
 0x433   :  { %1975 = vrcp.f32 %v891_v52 }
 0x43c   :  { %v1974_v14 = vpop.eup %1973 }
 0x43d   :  { %v895_v35 = vmul.f32 %v1974_v14, %v894_v45  ;;  %v1976_v25 = vpop.eup %1975 }
 0x43e   :  { %v898_v34 = vsub.f32 1.0, %v1976_v25  ;;  %v900_v46 = vmul.f32 %v1976_v25, %v2453_v37  ;;  %v2545_v25 = vld [vmem:[#allocation4] ss:$12 sps:$4 sm:$0xff]  }
 0x43f   :  { %v896_v26 = vadd.f32 %v895_v35, %v2312_v43 }
 0x441   :  { %1977 = vtanh.f32 %v896_v26 }
 0x44b   :  { %v1978_v42 = vpop.eup %1977 }
 0x44c   :  { %v899_v40 = vmul.f32 %v1978_v42, %v898_v34  ;;  %v2556_v34 = vld [vmem:[#allocation4 + $0x18] ss:$12 sps:$4 sm:$0xff]   ;;  %v2560_v42 = vld [vmem:[#allocation4 + $0x34] ss:$12 sps:$4 sm:$0xff]  }
 0x44e   :  { %v2497_v44 = vadd.f32 %v900_v46, %v899_v40  ;;  %v2564_v40 = vld [vmem:[#allocation4 + $0x30] ss:$12 sps:$4 sm:$0xff]   ;;  %v2568_v46 = vld [vmem:[#allocation4 + $0x4c] ss:$12 sps:$4 sm:$0xff]  }
 0x450   :  { %v910_v62 = vpack.c.bf16 %v2497_v44, %v2497_v44 }
 0x452   :  { %944 = vmatmul.mubr.bf16.vlgmr.msra.gmra.mrb[28].mxu0 %v910_v62  ;;  %1797 = vmatmul.mubr.bf16.vlgmr.msra.gmra.mrb[28].mxu1 %v910_v62  ;;  %v2572_v62 = vld [vmem:[#allocation4 + $0x48] ss:$12 sps:$4 sm:$0xff]  }
 0x453   :  { %1024 = vmatpush1.bf16.msra.mxu0 %v2161_v5  ;;  %1801 = vmatpush3.bf16.msra.mxu1 %v2235_v24 }
 0x454   :  { %1025 = vmatprep.subr.bf16.mxu0 %v2164_v6  ;;  %1802 = vmatprep.subr.bf16.mxu1 %v2734_v38 }
 0x455   :  { %1055 = vmatprep.mubr.bf16.mxu0 %v2735_v41  ;;  %1816 = vmatprep.mubr.msk.bf16.mxu1 %vm2089_vm1, %v2734_v38 }
 0x457   :  { %1026 = vmatpush1.bf16.msra.mxu0 %v2168_v7  ;;  %1803 = vmatpush3.bf16.msra.mxu1 %v2242_v27 }
 0x458   :  { %1027 = vmatprep.subr.bf16.mxu0 %v2171_v8  ;;  %1804 = vmatprep.subr.bf16.mxu1 %v2734_v38 }
 0x45b   :  { %1028 = vmatpush1.bf16.msra.mxu0 %v2173_v9  ;;  %1805 = vmatpush3.bf16.msra.mxu1 %v2251_v28 }
 0x45c   :  { %1029 = vmatprep.subr.bf16.mxu0 %v2176_v10  ;;  %1806 = vmatprep.subr.bf16.mxu1 %v2734_v38 }
 0x45f   :  { %1030 = vmatpush1.bf16.msra.mxu0 %v2186_v13  ;;  %1807 = vmatpush3.bf16.msra.mxu1 %v2259_v29 }
 0x460   :  { %1031 = vmatprep.subr.bf16.mxu0 %v2198_v16  ;;  %1808 = vmatprep.subr.bf16.mxu1 %v2734_v38 }
 0x463   :  { %1032 = vmatpush1.bf16.msra.mxu0 %v2201_v17  ;;  %1809 = vmatpush3.bf16.msra.mxu1 %v2265_v30 }
 0x464   :  { %1033 = vmatprep.subr.bf16.mxu0 %v2205_v18  ;;  %1810 = vmatprep.subr.bf16.mxu1 %v2734_v38 }
 0x467   :  { %1034 = vmatpush1.bf16.msra.mxu0 %v2211_v19  ;;  %1811 = vmatpush3.bf16.msra.mxu1 %v2270_v31 }
 0x468   :  { %1035 = vmatprep.subr.bf16.mxu0 %v2215_v20  ;;  %1812 = vmatprep.subr.bf16.mxu1 %v2734_v38 }
 0x46b   :  { %1036 = vmatpush1.bf16.msra.mxu0 %v2217_v21  ;;  %1813 = vmatpush3.bf16.msra.mxu1 %v2274_v32 }
 0x46c   :  { %1037 = vmatprep.subr.bf16.mxu0 %v2219_v22  ;;  %1814 = vmatprep.subr.bf16.mxu1 %v2734_v38 }
 0x46f   :  { %1038 = vmatpush1.bf16.msra.mxu0 %v2229_v23  ;;  %1815 = vmatpush3.bf16.msra.mxu1 %v2278_v33 }
 0x470   :  { %1135 = vmatprep.subr.bf16.mxu0 %v2159_v4  ;;  %1820 = vmatprep.subr.bf16.mxu1 %v2734_v38 }
 0x525   :  { %v945_v5 = vpop.f32.mrb[28].mxu0  ;;  %v986_v6 = vpop.f32.mrb[28].mxu1 }
 0x526   :  { %v992_v7 = vadd.f32 %v945_v5, %v2341_v39  ;;  %v947_v8 = vpop.f32.mrb[29].mxu0  ;;  %v1798_v9 = vpop.f32.mrb[29].mxu1  ;;  %v1006_v12 = vadd.f32 %v2360_v54, %v986_v6 }
 0x527   :  { %v999_v10 = vadd.f32 %v947_v8, %v2343_v48  ;;  %v949_v13 = vpop.f32.mrb[30].mxu0  ;;  %v989_v43 = vpop.f32.mrb[30].mxu1 }
 0x528   :  { %v1584_v51 = vmul.f32 -1.442695, %v992_v7  ;;  %v950_v61 = vpop.f32.mrb[31].mxu0  ;;  %v1799_v0 = vpop.f32.mrb[31].mxu1 }
 0x529   :  { %v1585_v63 = vmul.f32 -1.442695, %v999_v10 }
 0x52a   :  { %1979 = vpow2.f32 %v1584_v51 }
 0x52b   :  { %1981 = vpow2.f32 %v1585_v63 }
 0x534   :  { %v1980_v1 = vpop.eup %1979 }
 0x535   :  { %v996_v4 = vadd.f32 1.0, %v1980_v1  ;;  %v1982_v60 = vpop.eup %1981 }
 0x536   :  { %v1003_v57 = vadd.f32 1.0, %v1982_v60 }
 0x537   :  { %1983 = vrcp.f32 %v996_v4 }
 0x538   :  { %1985 = vrcp.f32 %v1003_v57 }
 0x541   :  { %v1984_v39 = vpop.eup %1983 }
 0x542   :  { %v1007_v2 = vmul.f32 %v1984_v39, %v1006_v12  ;;  %v1986_v56 = vpop.eup %1985 }
 0x543   :  { %v1010_v11 = vsub.f32 1.0, %v1986_v56  ;;  %v1012_v14 = vmul.f32 %v1986_v56, %v2497_v44 }
 0x544   :  { %v1008_v48 = vadd.f32 %v1007_v2, %v2321_v49  ;;  %v2549_v49 = vld [vmem:[#allocation4 + $0x1c] ss:$12 sps:$4 sm:$0xff]   ;;  %v2033_v2 = vld [vmem:[#allocation4 + $0xac] ss:$12 sps:$4 sm:$0xff]  }
 0x546   :  { %1987 = vtanh.f32 %v1008_v48 }
 0x550   :  { %v1988_v52 = vpop.eup %1987 }
 0x551   :  { %v1011_v45 = vmul.f32 %v1988_v52, %v1010_v11 }
 0x553   :  { %v2541_v35 = vadd.f32 %v1012_v14, %v1011_v45 }
 0x555   :  { %v1022_v26 = vpack.c.bf16 %v2541_v35, %v2541_v35 }
 0x557   :  { %1056 = vmatmul.mubr.bf16.vlgmr.msra.gmra.mrb[32].mxu0 %v1022_v26  ;;  %1817 = vmatmul.mubr.bf16.vlgmr.msra.gmra.mrb[32].mxu1 %v1022_v26 }
 0x558   :  { %1136 = vmatpush1.bf16.msra.mxu0 %v2545_v25  ;;  %1821 = vmatpush3.bf16.msra.mxu1 %v2235_v24 }
 0x559   :  { %1137 = vmatprep.subr.bf16.mxu0 %v2549_v49  ;;  %1822 = vmatprep.subr.bf16.mxu1 %v2734_v38 }
 0x55a   :  { %1167 = vmatprep.mubr.bf16.mxu0 %v2735_v41  ;;  %1836 = vmatprep.mubr.msk.bf16.mxu1 %vm2089_vm1, %v2734_v38 }
 0x55c   :  { %1138 = vmatpush1.bf16.msra.mxu0 %v2556_v34  ;;  %1823 = vmatpush3.bf16.msra.mxu1 %v2242_v27 }
 0x55d   :  { %1139 = vmatprep.subr.bf16.mxu0 %v2560_v42  ;;  %1824 = vmatprep.subr.bf16.mxu1 %v2734_v38 }
 0x560   :  { %1140 = vmatpush1.bf16.msra.mxu0 %v2564_v40  ;;  %1825 = vmatpush3.bf16.msra.mxu1 %v2251_v28 }
 0x561   :  { %1141 = vmatprep.subr.bf16.mxu0 %v2568_v46  ;;  %1826 = vmatprep.subr.bf16.mxu1 %v2734_v38 }
 0x564   :  { %1142 = vmatpush1.bf16.msra.mxu0 %v2572_v62  ;;  %1827 = vmatpush3.bf16.msra.mxu1 %v2259_v29 }
 0x565   :  { %1143 = vmatprep.subr.bf16.mxu0 %v2198_v16  ;;  %1828 = vmatprep.subr.bf16.mxu1 %v2734_v38  ;;  %v2026_v16 = vld [vmem:[#allocation4 + $0x4] ss:$12 sps:$4 sm:$0xff]  }
 0x568   :  { %1144 = vmatpush1.bf16.msra.mxu0 %v2201_v17  ;;  %1829 = vmatpush3.bf16.msra.mxu1 %v2265_v30 }
 0x569   :  { %1145 = vmatprep.subr.bf16.mxu0 %v2205_v18  ;;  %1830 = vmatprep.subr.bf16.mxu1 %v2734_v38 }
 0x56c   :  { %1146 = vmatpush1.bf16.msra.mxu0 %v2211_v19  ;;  %1831 = vmatpush3.bf16.msra.mxu1 %v2270_v31 }
 0x56d   :  { %1147 = vmatprep.subr.bf16.mxu0 %v2215_v20  ;;  %1832 = vmatprep.subr.bf16.mxu1 %v2734_v38 }
 0x570   :  { %1148 = vmatpush1.bf16.msra.mxu0 %v2217_v21  ;;  %1833 = vmatpush3.bf16.msra.mxu1 %v2274_v32 }
 0x571   :  { %1149 = vmatprep.subr.bf16.mxu0 %v2219_v22  ;;  %1834 = vmatprep.subr.bf16.mxu1 %v2734_v38 }
 0x574   :  { %1150 = vmatpush1.bf16.msra.mxu0 %v2229_v23  ;;  %1835 = vmatpush3.bf16.msra.mxu1 %v2278_v33 }
 0x575   :  { %1247 = vmatprep.subr.bf16.mxu0 %v2026_v16  ;;  %1840 = vmatprep.subr.bf16.mxu1 %v2734_v38 }
 0x62a   :  { %v1057_v17 = vpop.f32.mrb[32].mxu0  ;;  %v1098_v18 = vpop.f32.mrb[32].mxu1 }
 0x62b   :  { %v1104_v19 = vadd.f32 %v1057_v17, %v2345_v55  ;;  %v1059_v20 = vpop.f32.mrb[33].mxu0  ;;  %v1818_v21 = vpop.f32.mrb[33].mxu1  ;;  %v1118_v61 = vadd.f32 %v2360_v54, %v1098_v18 }
 0x62c   :  { %v1111_v5 = vadd.f32 %v1059_v20, %v2347_v3  ;;  %v1061_v6 = vpop.f32.mrb[34].mxu0  ;;  %v1101_v22 = vpop.f32.mrb[34].mxu1 }
 0x62d   :  { %v1586_v7 = vmul.f32 -1.442695, %v1104_v19  ;;  %v1062_v8 = vpop.f32.mrb[35].mxu0  ;;  %v1819_v9 = vpop.f32.mrb[35].mxu1  ;;  %v1932_v22 = vld [vmem:[%s2724_s5 + $0x8] sm:$0xff]  }
 0x62e   :  { %v1587_v23 = vmul.f32 -1.442695, %v1111_v5  ;;  %v1934_v8 = vld [vmem:[%s2724_s5 + $0x18] sm:$0xff]   ;;  %v1937_v9 = vld [vmem:[%s2724_s5 + $0x30] sm:$0xff]  }
 0x62f   :  { %1989 = vpow2.f32 %v1586_v7  ;;  %v1361_v7 = vpack.c.bf16 %v2409_v59, %v2365_v50  ;;  %v1935_v50 = vld [vmem:[%s2724_s5 + $0x20] sm:$0xff]   ;;  %v1936_v59 = vld [vmem:[%s2724_s5 + $0x28] sm:$0xff]  }
 0x630   :  { %1991 = vpow2.f32 %v1587_v23  ;;  %v1938_v23 = vld [vmem:[%s2724_s5 + $0x38] sm:$0xff]  }
 0x639   :  { %v1990_v10 = vpop.eup %1989 }
 0x63a   :  { %v1108_v13 = vadd.f32 1.0, %v1990_v10  ;;  %v1992_v43 = vpop.eup %1991  ;;  %v1362_v10 = vpack.c.bf16 %v2497_v44, %v2453_v37 }
 0x63b   :  { %v1115_v51 = vadd.f32 1.0, %v1992_v43 }
 0x63c   :  { %1993 = vrcp.f32 %v1108_v13 }
 0x63d   :  { %1995 = vrcp.f32 %v1115_v51 }
 0x646   :  { %v1994_v55 = vpop.eup %1993 }
 0x647   :  { %v1119_v0 = vmul.f32 %v1994_v55, %v1118_v61  ;;  %v1996_v63 = vpop.eup %1995 }
 0x648   :  { %v1122_v1 = vsub.f32 1.0, %v1996_v63  ;;  %v1124_v57 = vmul.f32 %v1996_v63, %v2541_v35 }
 0x649   :  { %v1120_v3 = vadd.f32 %v1119_v0, %v2327_v53  ;;  %v2029_v53 = vld [vmem:[#allocation4 + $0x7c] ss:$12 sps:$4 sm:$0xff]  }
 0x64b   :  { %1997 = vtanh.f32 %v1120_v3  ;;  %v2736_v3 = vld [vmem:[#allocation11_spill] sm:$0xff] }
 0x655   :  { %v1998_v4 = vpop.eup %1997 }
 0x656   :  { %v1123_v60 = vmul.f32 %v1998_v4, %v1122_v1 }
 0x658   :  { %v2598_v12 = vadd.f32 %v1124_v57, %v1123_v60 }
 0x65a   :  { %v1134_v39 = vpack.c.bf16 %v2598_v12, %v2598_v12  ;;  %v1363_v13 = vpack.c.bf16 %v2598_v12, %v2541_v35 }
 0x65c   :  { %1168 = vmatmul.mubr.bf16.vlgmr.msra.gmra.mrb[36].mxu0 %v1134_v39  ;;  %1837 = vmatmul.mubr.bf16.vlgmr.msra.gmra.mrb[36].mxu1 %v1134_v39 }
 0x65d   :  { %1248 = vmatpush1.bf16.msra.mxu0 %v2545_v25  ;;  %1841 = vmatpush3.bf16.msra.mxu1 %v2235_v24  ;;  %v2027_v24 = vld [vmem:[#allocation4 + $0x64] ss:$12 sps:$4 sm:$0xff]  }
 0x65e   :  { %1249 = vmatprep.subr.bf16.mxu0 %v2549_v49  ;;  %1842 = vmatprep.subr.bf16.mxu1 %v2734_v38 }
 0x65f   :  { %1279 = vmatprep.mubr.bf16.mxu0 %v2735_v41  ;;  %1856 = vmatprep.mubr.msk.bf16.mxu1 %vm2089_vm1, %v2734_v38  ;;  %v2031_v41 = vld [vmem:[#allocation4 + $0x94] ss:$12 sps:$4 sm:$0xff]  }
 0x661   :  { %1250 = vmatpush1.bf16.msra.mxu0 %v2556_v34  ;;  %1843 = vmatpush3.bf16.msra.mxu1 %v2242_v27  ;;  %v2028_v27 = vld [vmem:[#allocation4 + $0x60] ss:$12 sps:$4 sm:$0xff]  }
 0x662   :  { %1251 = vmatprep.subr.bf16.mxu0 %v2560_v42  ;;  %1844 = vmatprep.subr.bf16.mxu1 %v2734_v38 }
 0x665   :  { %1252 = vmatpush1.bf16.msra.mxu0 %v2564_v40  ;;  %1845 = vmatpush3.bf16.msra.mxu1 %v2251_v28  ;;  %v2030_v28 = vld [vmem:[#allocation4 + $0x78] ss:$12 sps:$4 sm:$0xff]  }
 0x666   :  { %1253 = vmatprep.subr.bf16.mxu0 %v2568_v46  ;;  %1846 = vmatprep.subr.bf16.mxu1 %v2734_v38 }
 0x669   :  { %1254 = vmatpush1.bf16.msra.mxu0 %v2572_v62  ;;  %1847 = vmatpush3.bf16.msra.mxu1 %v2259_v29  ;;  %v2032_v29 = vld [vmem:[#allocation4 + $0x90] ss:$12 sps:$4 sm:$0xff]  }
 0x66a   :  { %1255 = vmatprep.subr.bf16.mxu0 %v2027_v24  ;;  %1848 = vmatprep.subr.bf16.mxu1 %v2734_v38 }
 0x66d   :  { %1256 = vmatpush1.bf16.msra.mxu0 %v2028_v27  ;;  %1849 = vmatpush3.bf16.msra.mxu1 %v2265_v30  ;;  %v2034_v30 = vld [vmem:[#allocation4 + $0xa8] ss:$12 sps:$4 sm:$0xff]  }
 0x66e   :  { %1257 = vmatprep.subr.bf16.mxu0 %v2029_v53  ;;  %1850 = vmatprep.subr.bf16.mxu1 %v2734_v38 }
 0x671   :  { %1258 = vmatpush1.bf16.msra.mxu0 %v2030_v28  ;;  %1851 = vmatpush3.bf16.msra.mxu1 %v2270_v31  ;;  %v1931_v31 = vld [vmem:[%s2724_s5] sm:$0xff]  }
 0x672   :  { %1259 = vmatprep.subr.bf16.mxu0 %v2031_v41  ;;  %1852 = vmatprep.subr.bf16.mxu1 %v2734_v38  ;;  %v1592_v28 = vld [vmem:[%s2725_s6] ss:$0 sm:$0xff]  ;;  %v2737_v41 = vld [vmem:[#allocation10_spill] sm:$0xff] }
 0x675   :  { %1260 = vmatpush1.bf16.msra.mxu0 %v2032_v29  ;;  %1853 = vmatpush3.bf16.msra.mxu1 %v2274_v32 }
 0x676   :  { %1261 = vmatprep.subr.bf16.mxu0 %v2033_v2  ;;  %1854 = vmatprep.subr.bf16.mxu1 %v2734_v38 }
 0x679   :  { %1262 = vmatpush1.bf16.msra.mxu0 %v2034_v30  ;;  %1855 = vmatpush3.bf16.msra.mxu1 %v2278_v33 }
 0x67a   :  { %1860 = vmatprep.subr.bf16.mxu0 %v1931_v31 }
 0x72f   :  { %v1169_v48 = vpop.f32.mrb[36].mxu0  ;;  %v1210_v56 = vpop.f32.mrb[36].mxu1 }
 0x730   :  { %v1216_v11 = vadd.f32 %v1169_v48, %v2349_v58  ;;  %v1171_v52 = vpop.f32.mrb[37].mxu0  ;;  %v1838_v45 = vpop.f32.mrb[37].mxu1  ;;  %v1230_v62 = vadd.f32 %v2360_v54, %v1210_v56 }
 0x731   :  { %v1223_v32 = vadd.f32 %v1171_v52, %v2351_v15  ;;  %v1173_v14 = vpop.f32.mrb[38].mxu0  ;;  %v1213_v26 = vpop.f32.mrb[38].mxu1 }
 0x732   :  { %v1588_v38 = vmul.f32 -1.442695, %v1216_v11  ;;  %v1174_v25 = vpop.f32.mrb[39].mxu0  ;;  %v1839_v49 = vpop.f32.mrb[39].mxu1 }
 0x733   :  { %v1589_v33 = vmul.f32 -1.442695, %v1223_v32 }
 0x734   :  { %1999 = vpow2.f32 %v1588_v38 }
 0x735   :  { %2001 = vpow2.f32 %v1589_v33 }
 0x73e   :  { %v2000_v34 = vpop.eup %1999 }
 0x73f   :  { %v1220_v42 = vadd.f32 1.0, %v2000_v34  ;;  %v2002_v40 = vpop.eup %2001 }
 0x740   :  { %v1227_v46 = vadd.f32 1.0, %v2002_v40 }
 0x741   :  { %2003 = vrcp.f32 %v1220_v42 }
 0x742   :  { %2005 = vrcp.f32 %v1227_v46 }
 0x74b   :  { %v2004_v58 = vpop.eup %2003 }
 0x74c   :  { %v1231_v16 = vmul.f32 %v2004_v58, %v1230_v62  ;;  %v2006_v17 = vpop.eup %2005 }
 0x74d   :  { %v1234_v18 = vsub.f32 1.0, %v2006_v17  ;;  %v1236_v21 = vmul.f32 %v2006_v17, %v2598_v12 }
 0x74e   :  { %v1232_v15 = vadd.f32 %v1231_v16, %v2318_v47  ;;  %v1933_v47 = vld [vmem:[%s2724_s5 + $0x10] sm:$0xff]  }
 0x750   :  { %2007 = vtanh.f32 %v1232_v15 }
 0x75a   :  { %v2008_v19 = vpop.eup %2007 }
 0x75b   :  { %v1235_v20 = vmul.f32 %v2008_v19, %v1234_v18 }
 0x75d   :  { %v2635_v5 = vadd.f32 %v1236_v21, %v1235_v20 }
 0x75f   :  { %v1246_v6 = vpack.c.bf16 %v2635_v5, %v2635_v5 }
 0x761   :  { %1280 = vmatmul.mubr.bf16.vlgmr.msra.gmra.mrb[40].mxu0 %v1246_v6  ;;  %1857 = vmatmul.mubr.bf16.vlgmr.msra.gmra.mrb[40].mxu1 %v1246_v6 }
 0x762   :  { %1861 = vmatpush3.bf16.msra.mxu0 %v1931_v31  ;;  %1876 = vmatprep.mubr.bf16.mxu0 %v1361_v7 }
 0x763   :  { %1862 = vmatprep.subr.bf16.mxu0 %v1932_v22 }
 0x766   :  { %1863 = vmatpush3.bf16.msra.mxu0 %v1932_v22 }
 0x767   :  { %1864 = vmatprep.subr.bf16.mxu0 %v1933_v47 }
 0x76a   :  { %1865 = vmatpush3.bf16.msra.mxu0 %v1933_v47 }
 0x76b   :  { %1866 = vmatprep.subr.bf16.mxu0 %v1934_v8 }
 0x76e   :  { %1867 = vmatpush3.bf16.msra.mxu0 %v1934_v8 }
 0x76f   :  { %1868 = vmatprep.subr.bf16.mxu0 %v1935_v50 }
 0x772   :  { %1869 = vmatpush3.bf16.msra.mxu0 %v1935_v50 }
 0x773   :  { %1870 = vmatprep.subr.bf16.mxu0 %v1936_v59 }
 0x776   :  { %1871 = vmatpush3.bf16.msra.mxu0 %v1936_v59 }
 0x777   :  { %1872 = vmatprep.subr.bf16.mxu0 %v1937_v9 }
 0x77a   :  { %1873 = vmatpush3.bf16.msra.mxu0 %v1937_v9 }
 0x77b   :  { %1874 = vmatprep.subr.bf16.mxu0 %v1938_v23 }
 0x77e   :  { %1875 = vmatpush3.bf16.msra.mxu0 %v1938_v23 }
 0x781   :  { %1877 = vmatmul.mubr.bf16.vlgmr.msra.gmra.mrb[44].mxu0 %v1362_v10 }
 0x782   :  { %1880 = vmatprep.mubr.bf16.mxu0 %v1363_v13 }
 0x834   :  { %v1281_v43 = vpop.f32.mrb[40].mxu0  ;;  %v1322_v51 = vpop.f32.mrb[40].mxu1 }
 0x835   :  { %v1328_v61 = vadd.f32 %v1281_v43, %v2353_v36  ;;  %v1283_v55 = vpop.f32.mrb[41].mxu0  ;;  %v1858_v0 = vpop.f32.mrb[41].mxu1  ;;  %v1342_v27 = vadd.f32 %v2360_v54, %v1322_v51 }
 0x836   :  { %v1335_v63 = vadd.f32 %v1283_v55, %v2736_v3  ;;  %v1285_v1 = vpop.f32.mrb[42].mxu0  ;;  %v1325_v4 = vpop.f32.mrb[42].mxu1 }
 0x837   :  { %v1590_v60 = vmul.f32 -1.442695, %v1328_v61  ;;  %v1286_v57 = vpop.f32.mrb[43].mxu0  ;;  %v1859_v39 = vpop.f32.mrb[43].mxu1 }
 0x838   :  { %v1591_v37 = vmul.f32 -1.442695, %v1335_v63 }
 0x839   :  { %2009 = vpow2.f32 %v1590_v60 }
 0x83a   :  { %2011 = vpow2.f32 %v1591_v37 }
 0x843   :  { %v2010_v44 = vpop.eup %2009 }
 0x844   :  { %v1332_v35 = vadd.f32 1.0, %v2010_v44  ;;  %v2012_v12 = vpop.eup %2011 }
 0x845   :  { %v1339_v24 = vadd.f32 1.0, %v2012_v12 }
 0x846   :  { %2013 = vrcp.f32 %v1332_v35 }
 0x847   :  { %2015 = vrcp.f32 %v1339_v24 }
 0x850   :  { %v2014_v36 = vpop.eup %2013 }
 0x851   :  { %v1343_v53 = vmul.f32 %v2014_v36, %v1342_v27  ;;  %v2016_v45 = vpop.eup %2015 }
 0x852   :  { %v1346_v32 = vsub.f32 1.0, %v2016_v45  ;;  %v1348_v38 = vmul.f32 %v2016_v45, %v2635_v5 }
 0x853   :  { %v1344_v29 = vadd.f32 %v1343_v53, %v2737_v41 }
 0x854   :  { %v1878_v2 = vpop.f32.mrb[44].mxu0 }
 0x855   :  { %2017 = vtanh.f32 %v1344_v29  ;;  %v1479_v30 = vadd.f32 %v1878_v2, %v1592_v28  ;;  %v1470_v31 = vpop.f32.mrb[45].mxu0 }
 0x856   :  { %v1471_v48 = vadd.f32 %v1592_v28, %v1470_v31  ;;  %v1879_v56 = vpop.f32.mrb[46].mxu0 }
 0x857   :  { %1504 = vst.msk [vmem:[%s2726_s7 + $0x10] sm:$0xff] %vm1501_vm2, %v1479_v30  ;;  %v1482_v54 = vadd.f32 %v1879_v56, %v1592_v28  ;;  %v1473_v11 = vpop.f32.mrb[47].mxu0 }
 0x858   :  { %1502 = vst.msk [vmem:[%s2726_s7] sm:$0xff] %vm1501_vm2, %v1471_v48  ;;  %v1474_v52 = vadd.f32 %v1592_v28, %v1473_v11 }
 0x859   :  { %1505 = vst.msk [vmem:[%s2726_s7 + $0x18] sm:$0xff] %vm1501_vm2, %v1482_v54 }
 0x85a   :  { %1503 = vst.msk [vmem:[%s2726_s7 + $0x8] sm:$0xff] %vm1501_vm2, %v1474_v52 }
 0x85f   :  { %v2018_v14 = vpop.eup %2017 }
 0x860   :  { %v1347_v26 = vmul.f32 %v2018_v14, %v1346_v32 }
 0x862   :  { %v1349_v25 = vadd.f32 %v1348_v38, %v1347_v26 }
 0x864   :  { %v1364_v49 = vpack.c.bf16 %v1349_v25, %v2635_v5  ;;  %1352 = vst [vmem:[#allocation7] sm:$0xff] %v1349_v25 }
 0x866   :  { %1881 = vmatmul.mubr.bf16.gmra.mrb[48].mxu0 %v1364_v49 }
 0x867   :  { %2068 = shalt.err (!%p2065_p12)
}
 0x868   :  { %s2069_s12 = scalar_lea.hbm %s2727_s8, 128 }
 0x869   :  { %p2070_p13 = scmp.ne.s32.totalorder %s2727_s8, %s2069_s12  ;;  %p2073_p0 = scmp.lt.u32.totalorder %s2069_s12, %s2727_s8 }
 0x86b   :  { %p2075_p1 = pnand %p2073_p0, %p2070_p13 }
 0x86d   :  { %2078 = shalt.err (!%p2075_p1)
}
 0x86e   :  { %1521 = dma.vmem_to_hbm [thread:$0]  %s1519_s2, 128, %s2727_s8, [#allocation6]  }
 0x939   :  { %v1882_v33 = vpop.f32.mrb[48].mxu0 }
 0x93a   :  { %v1495_v34 = vadd.f32 %v1882_v33, %v1592_v28  ;;  %v1486_v42 = vpop.f32.mrb[49].mxu0 }
 0x93b   :  { %v1487_v40 = vadd.f32 %v1592_v28, %v1486_v42  ;;  %v1883_v46 = vpop.f32.mrb[50].mxu0 }
 0x93c   :  { %1508 = vst.msk [vmem:[%s2726_s7 + $0x30] sm:$0xff] %vm1501_vm2, %v1495_v34  ;;  %v1498_v62 = vadd.f32 %v1883_v46, %v1592_v28  ;;  %v1489_v58 = vpop.f32.mrb[51].mxu0 }
 0x93d   :  { %1506 = vst.msk [vmem:[%s2726_s7 + $0x20] sm:$0xff] %vm1501_vm2, %v1487_v40  ;;  %v1490_v16 = vadd.f32 %v1592_v28, %v1489_v58 }
 0x93e   :  { %1509 = vst.msk [vmem:[%s2726_s7 + $0x38] sm:$0xff] %vm1501_vm2, %v1498_v62 }
 0x93f   :  { %1507 = vst.msk [vmem:[%s2726_s7 + $0x28] sm:$0xff] %vm1501_vm2, %v1490_v16 }
 0x940   :  { %2081 = dma.done.wait [#allocation6], 128  }
 0x941   :  { %2082 = vsyncadd [#allocation6], 4294967168 }
 0x942   :  { %1527 = vsyncpa [#allocation5], 1 }
 0x943   :  { %1528 = vsyncpa [#allocation6], 1 }

</bundles_post_ra>
